<compile_context>
chip_gen: v5e
topology: v5e:2x2
jax: 0.10.0
libtpu: 0.0.40
codegen_flags: <defaults>
</compile_context>

<pallas_src>
import functools

import jax
import jax.numpy as jnp
from jax.experimental import pallas as pl
from jax.experimental.pallas import tpu as pltpu


def _ceil_to(v, m):
    return ((v + m - 1) // m) * m


# ----------------------------------------------------------------------------
# Fused DFMNET kernel
# ----------------------------------------------------------------------------
def _dfmnet_kernel(x_ref, lstm_w_ref, kdn_w_ref, bias_ref, out_ref, h_seq_scr,
                   *, seq, bp, hidden, n_in_pad, n_kdn, n_out, n_lstm_layer):
    """Fused DFMNET forward.

    x_ref      : (seq*bp, n_in_pad) f32  — time-major, batch padded to bp
    lstm_w_ref : (n_in_pad + (2L-1)*H, 4H) bf16 — [w_ih0; w_hh0; w_ih1; w_hh1;...]
    kdn_w_ref  : (H + n_in_pad + 5K, K) bf16    — [w1a; w1b; w2..w5; w6(padded)]
    bias_ref   : (L + 6, max(4H, K)) f32        — one bias per row, zero padded
    out_ref    : (bp, n_out) f32
    h_seq_scr  : (seq*bp, H) f32 VMEM scratch — previous layer's h sequence
    Gate column order everywhere is (i, f, o, g).
    """
    H = hidden
    K = n_kdn
    f32 = jnp.float32
    bf16 = jnp.bfloat16

    x_all = x_ref[...].astype(bf16)                      # (seq*bp, n_in_pad)
    lstm_w = lstm_w_ref[...]                             # load slabs once
    kdn_w = kdn_w_ref[...]
    biases = bias_ref[...]

    def lstm_layer(layer_in, w_ih, w_hh, b, write_seq):
        # Input projection hoisted out of the serial recurrence (one matmul).
        gx = jnp.dot(layer_in, w_ih, preferred_element_type=f32) + b
        h = jnp.zeros((bp, H), f32)
        c = jnp.zeros((bp, H), f32)
        for t in range(seq):                             # static -> fully unrolled
            row = t * bp                                 # bp % 8 == 0 -> aligned
            gates = gx[row:row + bp, :] + jnp.dot(
                h.astype(bf16), w_hh, preferred_element_type=f32)
            # (i, f, o, g) order: sigmoid over first 3H lanes, tanh over last H.
            sig = jax.nn.sigmoid(gates[:, :3 * H])
            g_g = jnp.tanh(gates[:, 3 * H:])
            i_g = sig[:, 0 * H:1 * H]
            f_g = sig[:, 1 * H:2 * H]
            o_g = sig[:, 2 * H:3 * H]
            c = f_g * c + i_g * g_g                      # elementwise stays f32
            h = o_g * jnp.tanh(c)
            if write_seq:
                h_seq_scr[row:row + bp, :] = h           # aligned VMEM-only store
        return h

    # ---- stacked LSTM (inference: inter-layer dropout is identity) ----------
    layer_in = x_all
    h_last = None
    r0 = 0
    for l in range(n_lstm_layer):
        in_rows = n_in_pad if l == 0 else H
        w_ih = lstm_w[r0:r0 + in_rows, :]
        r0 += in_rows
        w_hh = lstm_w[r0:r0 + H, :]
        r0 += H
        b = biases[l:l + 1, 0:4 * H]
        write_seq = l < n_lstm_layer - 1                 # last layer: only h[-1]
        h_last = lstm_layer(layer_in, w_ih, w_hh, b, write_seq)
        if write_seq:
            layer_in = h_seq_scr[...].astype(bf16)

    # ---- KDN MLP; concat([h_last, x[:, -1, :]]) as split first-layer matmul -
    r1 = 0
    w1a = kdn_w[r1:r1 + H, :]
    r1 += H
    w1b = kdn_w[r1:r1 + n_in_pad, :]
    r1 += n_in_pad
    x_last = x_all[(seq - 1) * bp:, :]                   # == x[:, -1, :] (aligned)
    a = (jnp.dot(h_last.astype(bf16), w1a, preferred_element_type=f32)
         + jnp.dot(x_last, w1b, preferred_element_type=f32)
         + biases[n_lstm_layer:n_lstm_layer + 1, 0:K])
    a = jnp.maximum(a, 0.0)
    for i in range(5):                                   # 4 hidden + output layer
        w = kdn_w[r1:r1 + K, :]
        r1 += K
        b = biases[n_lstm_layer + 1 + i:n_lstm_layer + 2 + i, 0:K]
        a = jnp.dot(a.astype(bf16), w, preferred_element_type=f32) + b
        if i < 4:                                        # ReLU after all but last
            a = jnp.maximum(a, 0.0)
    out_ref[...] = a[:, 0:n_out].astype(out_ref.dtype)


# ----------------------------------------------------------------------------
# Host-side wrapper: pack params into 3 slabs, pad batch/input dims, call kernel
# ----------------------------------------------------------------------------
def dfmnet_forward(x, params, *, n_lstm_layer, n_lstm_hidden, n_kdn_hidden,
                   n_output):
    batch, seq, n_input = x.shape
    H = n_lstm_hidden
    K = n_kdn_hidden
    assert H % 16 == 0 and K % 16 == 0 and K >= n_output
    bp = _ceil_to(max(batch, 8), 8)          # sublane-aligned batch
    ni_pad = _ceil_to(max(n_input, 16), 16)  # bf16 sublane packing for slab rows
    BW = max(4 * H, K)                       # bias slab lane width
    bf16 = jnp.bfloat16

    # Reorder gate columns (torch i,f,g,o) -> (i,f,o,g).
    def reorder(w):
        return jnp.concatenate(
            [w[:, :H], w[:, H:2 * H], w[:, 3 * H:4 * H], w[:, 2 * H:3 * H]],
            axis=1)

    # Time-major, batch- and feature-padded input: row t*bp + b == x[b, t, :].
    x_tm = jnp.transpose(x, (1, 0, 2))
    x_tm = jnp.pad(x_tm, ((0, 0), (0, bp - batch), (0, ni_pad - n_input)))
    x_flat = x_tm.reshape(seq * bp, ni_pad)

    # LSTM weight slab (bf16) + LSTM bias rows.
    lstm_rows, bias_rows = [], []
    for l in range(n_lstm_layer):
        w_ih = reorder(params[f"lstm{l}_w_ih"])
        w_hh = reorder(params[f"lstm{l}_w_hh"])
        b = reorder(params[f"lstm{l}_b"])
        if l == 0:
            w_ih = jnp.pad(w_ih, ((0, ni_pad - n_input), (0, 0)))
        lstm_rows += [w_ih, w_hh]
        bias_rows.append(jnp.pad(b, ((0, 0), (0, BW - 4 * H))))
    lstm_slab = jnp.concatenate(lstm_rows, axis=0).astype(bf16)

    # KDN weight slab (bf16): first layer split into h-part / x-part rows.
    kws, kbs = params["kdn_weights"], params["kdn_biases"]
    w1 = kws[0]                                        # (H + n_input, K)
    w1a = w1[:H]
    w1b = jnp.pad(w1[H:], ((0, ni_pad - n_input), (0, 0)))
    w_last = jnp.pad(kws[5], ((0, 0), (0, K - n_output)))
    kdn_slab = jnp.concatenate([w1a, w1b] + list(kws[1:5]) + [w_last],
                               axis=0).astype(bf16)

    # Bias slab (f32): rows [LSTM biases..., KDN biases...], zero padded to BW.
    for b in kbs:
        bias_rows.append(jnp.pad(b, ((0, 0), (0, BW - b.shape[1]))))
    bias_slab = jnp.concatenate(bias_rows, axis=0)     # (L + 6, BW) f32

    kernel = functools.partial(
        _dfmnet_kernel, seq=seq, bp=bp, hidden=H, n_in_pad=ni_pad, n_kdn=K,
        n_out=n_output, n_lstm_layer=n_lstm_layer)
    out = pl.pallas_call(
        kernel,
        out_shape=jax.ShapeDtypeStruct((bp, n_output), jnp.float32),
        in_specs=[pl.BlockSpec(memory_space=pltpu.MemorySpace.VMEM)] * 4,
        out_specs=pl.BlockSpec(memory_space=pltpu.MemorySpace.VMEM),
        scratch_shapes=[pltpu.VMEM((seq * bp, H), jnp.float32)],
    )(x_flat, lstm_slab, kdn_slab, bias_slab)
    return out[:batch]


# ----------------------------------------------------------------------------
# Deterministic parameter construction (synthetic weights, f32 masters,
# torch-style layout: (in, 4H) weights, gate order i,f,g,o, b = b_ih + b_hh)
# ----------------------------------------------------------------------------
def make_params(key, n_input, n_output, n_lstm_layer, n_lstm_hidden,
                n_kdn_hidden):
    params = {}
    H = n_lstm_hidden
    for l in range(n_lstm_layer):
        in_dim = n_input if l == 0 else H
        key, k1, k2, k3, k4 = jax.random.split(key, 5)
        scale = 1.0 / jnp.sqrt(H)
        params[f"lstm{l}_w_ih"] = (jax.random.normal(k1, (in_dim, 4 * H),
                                                     jnp.float32) * scale)
        params[f"lstm{l}_w_hh"] = (jax.random.normal(k2, (H, 4 * H),
                                                     jnp.float32) * scale)
        b_ih = jax.random.normal(k3, (1, 4 * H), jnp.float32) * scale
        b_hh = jax.random.normal(k4, (1, 4 * H), jnp.float32) * scale
        params[f"lstm{l}_b"] = b_ih + b_hh
    # KDN: (H + n_input) -> 5 x n_kdn_hidden -> n_output, xavier_normal_ weights
    dims = [H + n_input] + [n_kdn_hidden] * 5 + [n_output]
    ws, bs = [], []
    for i in range(len(dims) - 1):
        key, kw = jax.random.split(key)
        std = jnp.sqrt(2.0 / (dims[i] + dims[i + 1]))
        ws.append(jax.random.normal(kw, (dims[i], dims[i + 1]),
                                    jnp.float32) * std)
        bs.append(jnp.zeros((1, dims[i + 1]), jnp.float32))
    params["kdn_weights"] = ws
    params["kdn_biases"] = bs
    return params


if __name__ == "__main__":
    # Small shapes consistent with the module's forward().
    batch, seq, n_input = 2, 8, 4
    n_output = 4
    n_lstm_layer = 2
    n_lstm_hidden = 32
    n_kdn_hidden = 32

    key = jax.random.PRNGKey(0)
    key, kx = jax.random.split(key)
    x = jax.random.normal(kx, (batch, seq, n_input), jnp.float32)

    params = make_params(key, n_input, n_output, n_lstm_layer,
                         n_lstm_hidden, n_kdn_hidden)

    fwd = jax.jit(functools.partial(dfmnet_forward,
                                    n_lstm_layer=n_lstm_layer,
                                    n_lstm_hidden=n_lstm_hidden,
                                    n_kdn_hidden=n_kdn_hidden,
                                    n_output=n_output))
    y = fwd(x, params)
    jax.block_until_ready(y)
    assert y.shape == (batch, n_output)
    assert bool(jnp.all(jnp.isfinite(y)))
    print("KERNEL_OK")
</pallas_src>

<mosaic_0001>
module attributes {stable_mosaic.version = 11 : i64} {
  func.func @_dfmnet_kernel(%arg0: memref<64x16xf32, #tpu.memory_space<vmem>>, %arg1: memref<112x128xbf16, #tpu.memory_space<vmem>>, %arg2: memref<208x32xbf16, #tpu.memory_space<vmem>>, %arg3: memref<8x128xf32, #tpu.memory_space<vmem>>, %arg4: memref<8x4xf32, #tpu.memory_space<vmem>>, %arg5: memref<64x32xf32, #tpu.memory_space<vmem>>) attributes {dimension_semantics = [], scalar_prefetch = 0 : i64, scratch_operands = 1 : i64, tpu.core_type = #tpu.core_type<tc>} {
    %c0 = arith.constant 0 : index
    %c0_0 = arith.constant 0 : index
    %0 = vector.load %arg0[%c0, %c0_0] : memref<64x16xf32, #tpu.memory_space<vmem>>, vector<64x16xf32>
    %1 = arith.truncf %0 : vector<64x16xf32> to vector<64x16xbf16>
    %c0_1 = arith.constant 0 : index
    %c0_2 = arith.constant 0 : index
    %2 = vector.load %arg1[%c0_1, %c0_2] : memref<112x128xbf16, #tpu.memory_space<vmem>>, vector<112x128xbf16>
    %c0_3 = arith.constant 0 : index
    %c0_4 = arith.constant 0 : index
    %3 = vector.load %arg2[%c0_3, %c0_4] : memref<208x32xbf16, #tpu.memory_space<vmem>>, vector<208x32xbf16>
    %c0_5 = arith.constant 0 : index
    %c0_6 = arith.constant 0 : index
    %4 = vector.load %arg3[%c0_5, %c0_6] : memref<8x128xf32, #tpu.memory_space<vmem>>, vector<8x128xf32>
    %5 = vector.extract_strided_slice %2 {offsets = [0, 0], sizes = [16, 128], strides = [1, 1]} : vector<112x128xbf16> to vector<16x128xbf16>
    %6 = vector.extract_strided_slice %2 {offsets = [16, 0], sizes = [32, 128], strides = [1, 1]} : vector<112x128xbf16> to vector<32x128xbf16>
    %7 = vector.extract_strided_slice %4 {offsets = [0, 0], sizes = [1, 128], strides = [1, 1]} : vector<8x128xf32> to vector<1x128xf32>
    %cst = arith.constant dense<0.000000e+00> : vector<64x128xf32>
    %8 = tpu.matmul %1, %5, %cst {dimension_numbers = #tpu.dot_dimension_numbers<[1], [0], [0], [1], [0, 0, 1, 1], [], []>} : vector<64x16xbf16>, vector<16x128xbf16>, vector<64x128xf32> -> vector<64x128xf32>
    %9 = vector.broadcast %7 : vector<1x128xf32> to vector<64x128xf32>
    %10 = arith.addf %8, %9 : vector<64x128xf32>
    %cst_7 = arith.constant 0.000000e+00 : f32
    %11 = vector.broadcast %cst_7 : f32 to vector<8x32xf32>
    %cst_8 = arith.constant 0.000000e+00 : f32
    %12 = vector.broadcast %cst_8 : f32 to vector<8x32xf32>
    %13 = vector.extract_strided_slice %10 {offsets = [0, 0], sizes = [8, 128], strides = [1, 1]} : vector<64x128xf32> to vector<8x128xf32>
    %14 = arith.truncf %11 : vector<8x32xf32> to vector<8x32xbf16>
    %cst_9 = arith.constant dense<0.000000e+00> : vector<8x128xf32>
    %15 = tpu.matmul %14, %6, %cst_9 {dimension_numbers = #tpu.dot_dimension_numbers<[1], [0], [0], [1], [0, 0, 1, 1], [], []>} : vector<8x32xbf16>, vector<32x128xbf16>, vector<8x128xf32> -> vector<8x128xf32>
    %16 = arith.addf %13, %15 : vector<8x128xf32>
    %17 = vector.extract_strided_slice %16 {offsets = [0, 0], sizes = [8, 96], strides = [1, 1]} : vector<8x128xf32> to vector<8x96xf32>
    %18 = arith.negf %17 : vector<8x96xf32>
    %19 = math.exp %18 : vector<8x96xf32>
    %cst_10 = arith.constant 1.000000e+00 : f32
    %20 = vector.broadcast %cst_10 : f32 to vector<8x96xf32>
    %21 = arith.addf %20, %19 : vector<8x96xf32>
    %22 = arith.divf %20, %21 : vector<8x96xf32>
    %23 = vector.extract_strided_slice %16 {offsets = [0, 96], sizes = [8, 32], strides = [1, 1]} : vector<8x128xf32> to vector<8x32xf32>
    %24 = math.tanh %23 : vector<8x32xf32>
    %25 = vector.extract_strided_slice %22 {offsets = [0, 0], sizes = [8, 32], strides = [1, 1]} : vector<8x96xf32> to vector<8x32xf32>
    %26 = vector.extract_strided_slice %22 {offsets = [0, 32], sizes = [8, 32], strides = [1, 1]} : vector<8x96xf32> to vector<8x32xf32>
    %27 = vector.extract_strided_slice %22 {offsets = [0, 64], sizes = [8, 32], strides = [1, 1]} : vector<8x96xf32> to vector<8x32xf32>
    %28 = arith.mulf %26, %12 : vector<8x32xf32>
    %29 = arith.mulf %25, %24 : vector<8x32xf32>
    %30 = arith.addf %28, %29 : vector<8x32xf32>
    %31 = math.tanh %30 : vector<8x32xf32>
    %32 = arith.mulf %27, %31 : vector<8x32xf32>
    %c0_11 = arith.constant 0 : index
    %c0_12 = arith.constant 0 : index
    %33 = vector.load %arg5[%c0_11, %c0_12] : memref<64x32xf32, #tpu.memory_space<vmem>>, vector<8x32xf32>
    tpu.vector_store %arg5[%c0_11, %c0_12], %32 {strides = array<i32>} : memref<64x32xf32, #tpu.memory_space<vmem>>, vector<8x32xf32>,
    %34 = vector.extract_strided_slice %10 {offsets = [8, 0], sizes = [8, 128], strides = [1, 1]} : vector<64x128xf32> to vector<8x128xf32>
    %35 = arith.truncf %32 : vector<8x32xf32> to vector<8x32xbf16>
    %cst_13 = arith.constant dense<0.000000e+00> : vector<8x128xf32>
    %36 = tpu.matmul %35, %6, %cst_13 {dimension_numbers = #tpu.dot_dimension_numbers<[1], [0], [0], [1], [0, 0, 1, 1], [], []>} : vector<8x32xbf16>, vector<32x128xbf16>, vector<8x128xf32> -> vector<8x128xf32>
    %37 = arith.addf %34, %36 : vector<8x128xf32>
    %38 = vector.extract_strided_slice %37 {offsets = [0, 0], sizes = [8, 96], strides = [1, 1]} : vector<8x128xf32> to vector<8x96xf32>
    %39 = arith.negf %38 : vector<8x96xf32>
    %40 = math.exp %39 : vector<8x96xf32>
    %cst_14 = arith.constant 1.000000e+00 : f32
    %41 = vector.broadcast %cst_14 : f32 to vector<8x96xf32>
    %42 = arith.addf %41, %40 : vector<8x96xf32>
    %43 = arith.divf %41, %42 : vector<8x96xf32>
    %44 = vector.extract_strided_slice %37 {offsets = [0, 96], sizes = [8, 32], strides = [1, 1]} : vector<8x128xf32> to vector<8x32xf32>
    %45 = math.tanh %44 : vector<8x32xf32>
    %46 = vector.extract_strided_slice %43 {offsets = [0, 0], sizes = [8, 32], strides = [1, 1]} : vector<8x96xf32> to vector<8x32xf32>
    %47 = vector.extract_strided_slice %43 {offsets = [0, 32], sizes = [8, 32], strides = [1, 1]} : vector<8x96xf32> to vector<8x32xf32>
    %48 = vector.extract_strided_slice %43 {offsets = [0, 64], sizes = [8, 32], strides = [1, 1]} : vector<8x96xf32> to vector<8x32xf32>
    %49 = arith.mulf %47, %30 : vector<8x32xf32>
    %50 = arith.mulf %46, %45 : vector<8x32xf32>
    %51 = arith.addf %49, %50 : vector<8x32xf32>
    %52 = math.tanh %51 : vector<8x32xf32>
    %53 = arith.mulf %48, %52 : vector<8x32xf32>
    %c8 = arith.constant 8 : index
    %c0_15 = arith.constant 0 : index
    %54 = vector.load %arg5[%c8, %c0_15] : memref<64x32xf32, #tpu.memory_space<vmem>>, vector<8x32xf32>
    tpu.vector_store %arg5[%c8, %c0_15], %53 {strides = array<i32>} : memref<64x32xf32, #tpu.memory_space<vmem>>, vector<8x32xf32>,
    %55 = vector.extract_strided_slice %10 {offsets = [16, 0], sizes = [8, 128], strides = [1, 1]} : vector<64x128xf32> to vector<8x128xf32>
    %56 = arith.truncf %53 : vector<8x32xf32> to vector<8x32xbf16>
    %cst_16 = arith.constant dense<0.000000e+00> : vector<8x128xf32>
    %57 = tpu.matmul %56, %6, %cst_16 {dimension_numbers = #tpu.dot_dimension_numbers<[1], [0], [0], [1], [0, 0, 1, 1], [], []>} : vector<8x32xbf16>, vector<32x128xbf16>, vector<8x128xf32> -> vector<8x128xf32>
    %58 = arith.addf %55, %57 : vector<8x128xf32>
    %59 = vector.extract_strided_slice %58 {offsets = [0, 0], sizes = [8, 96], strides = [1, 1]} : vector<8x128xf32> to vector<8x96xf32>
    %60 = arith.negf %59 : vector<8x96xf32>
    %61 = math.exp %60 : vector<8x96xf32>
    %cst_17 = arith.constant 1.000000e+00 : f32
    %62 = vector.broadcast %cst_17 : f32 to vector<8x96xf32>
    %63 = arith.addf %62, %61 : vector<8x96xf32>
    %64 = arith.divf %62, %63 : vector<8x96xf32>
    %65 = vector.extract_strided_slice %58 {offsets = [0, 96], sizes = [8, 32], strides = [1, 1]} : vector<8x128xf32> to vector<8x32xf32>
    %66 = math.tanh %65 : vector<8x32xf32>
    %67 = vector.extract_strided_slice %64 {offsets = [0, 0], sizes = [8, 32], strides = [1, 1]} : vector<8x96xf32> to vector<8x32xf32>
    %68 = vector.extract_strided_slice %64 {offsets = [0, 32], sizes = [8, 32], strides = [1, 1]} : vector<8x96xf32> to vector<8x32xf32>
    %69 = vector.extract_strided_slice %64 {offsets = [0, 64], sizes = [8, 32], strides = [1, 1]} : vector<8x96xf32> to vector<8x32xf32>
    %70 = arith.mulf %68, %51 : vector<8x32xf32>
    %71 = arith.mulf %67, %66 : vector<8x32xf32>
    %72 = arith.addf %70, %71 : vector<8x32xf32>
    %73 = math.tanh %72 : vector<8x32xf32>
    %74 = arith.mulf %69, %73 : vector<8x32xf32>
    %c16 = arith.constant 16 : index
    %c0_18 = arith.constant 0 : index
    %75 = vector.load %arg5[%c16, %c0_18] : memref<64x32xf32, #tpu.memory_space<vmem>>, vector<8x32xf32>
    tpu.vector_store %arg5[%c16, %c0_18], %74 {strides = array<i32>} : memref<64x32xf32, #tpu.memory_space<vmem>>, vector<8x32xf32>,
    %76 = vector.extract_strided_slice %10 {offsets = [24, 0], sizes = [8, 128], strides = [1, 1]} : vector<64x128xf32> to vector<8x128xf32>
    %77 = arith.truncf %74 : vector<8x32xf32> to vector<8x32xbf16>
    %cst_19 = arith.constant dense<0.000000e+00> : vector<8x128xf32>
    %78 = tpu.matmul %77, %6, %cst_19 {dimension_numbers = #tpu.dot_dimension_numbers<[1], [0], [0], [1], [0, 0, 1, 1], [], []>} : vector<8x32xbf16>, vector<32x128xbf16>, vector<8x128xf32> -> vector<8x128xf32>
    %79 = arith.addf %76, %78 : vector<8x128xf32>
    %80 = vector.extract_strided_slice %79 {offsets = [0, 0], sizes = [8, 96], strides = [1, 1]} : vector<8x128xf32> to vector<8x96xf32>
    %81 = arith.negf %80 : vector<8x96xf32>
    %82 = math.exp %81 : vector<8x96xf32>
    %cst_20 = arith.constant 1.000000e+00 : f32
    %83 = vector.broadcast %cst_20 : f32 to vector<8x96xf32>
    %84 = arith.addf %83, %82 : vector<8x96xf32>
    %85 = arith.divf %83, %84 : vector<8x96xf32>
    %86 = vector.extract_strided_slice %79 {offsets = [0, 96], sizes = [8, 32], strides = [1, 1]} : vector<8x128xf32> to vector<8x32xf32>
    %87 = math.tanh %86 : vector<8x32xf32>
    %88 = vector.extract_strided_slice %85 {offsets = [0, 0], sizes = [8, 32], strides = [1, 1]} : vector<8x96xf32> to vector<8x32xf32>
    %89 = vector.extract_strided_slice %85 {offsets = [0, 32], sizes = [8, 32], strides = [1, 1]} : vector<8x96xf32> to vector<8x32xf32>
    %90 = vector.extract_strided_slice %85 {offsets = [0, 64], sizes = [8, 32], strides = [1, 1]} : vector<8x96xf32> to vector<8x32xf32>
    %91 = arith.mulf %89, %72 : vector<8x32xf32>
    %92 = arith.mulf %88, %87 : vector<8x32xf32>
    %93 = arith.addf %91, %92 : vector<8x32xf32>
    %94 = math.tanh %93 : vector<8x32xf32>
    %95 = arith.mulf %90, %94 : vector<8x32xf32>
    %c24 = arith.constant 24 : index
    %c0_21 = arith.constant 0 : index
    %96 = vector.load %arg5[%c24, %c0_21] : memref<64x32xf32, #tpu.memory_space<vmem>>, vector<8x32xf32>
    tpu.vector_store %arg5[%c24, %c0_21], %95 {strides = array<i32>} : memref<64x32xf32, #tpu.memory_space<vmem>>, vector<8x32xf32>,
    %97 = vector.extract_strided_slice %10 {offsets = [32, 0], sizes = [8, 128], strides = [1, 1]} : vector<64x128xf32> to vector<8x128xf32>
    %98 = arith.truncf %95 : vector<8x32xf32> to vector<8x32xbf16>
    %cst_22 = arith.constant dense<0.000000e+00> : vector<8x128xf32>
    %99 = tpu.matmul %98, %6, %cst_22 {dimension_numbers = #tpu.dot_dimension_numbers<[1], [0], [0], [1], [0, 0, 1, 1], [], []>} : vector<8x32xbf16>, vector<32x128xbf16>, vector<8x128xf32> -> vector<8x128xf32>
    %100 = arith.addf %97, %99 : vector<8x128xf32>
    %101 = vector.extract_strided_slice %100 {offsets = [0, 0], sizes = [8, 96], strides = [1, 1]} : vector<8x128xf32> to vector<8x96xf32>
    %102 = arith.negf %101 : vector<8x96xf32>
    %103 = math.exp %102 : vector<8x96xf32>
    %cst_23 = arith.constant 1.000000e+00 : f32
    %104 = vector.broadcast %cst_23 : f32 to vector<8x96xf32>
    %105 = arith.addf %104, %103 : vector<8x96xf32>
    %106 = arith.divf %104, %105 : vector<8x96xf32>
    %107 = vector.extract_strided_slice %100 {offsets = [0, 96], sizes = [8, 32], strides = [1, 1]} : vector<8x128xf32> to vector<8x32xf32>
    %108 = math.tanh %107 : vector<8x32xf32>
    %109 = vector.extract_strided_slice %106 {offsets = [0, 0], sizes = [8, 32], strides = [1, 1]} : vector<8x96xf32> to vector<8x32xf32>
    %110 = vector.extract_strided_slice %106 {offsets = [0, 32], sizes = [8, 32], strides = [1, 1]} : vector<8x96xf32> to vector<8x32xf32>
    %111 = vector.extract_strided_slice %106 {offsets = [0, 64], sizes = [8, 32], strides = [1, 1]} : vector<8x96xf32> to vector<8x32xf32>
    %112 = arith.mulf %110, %93 : vector<8x32xf32>
    %113 = arith.mulf %109, %108 : vector<8x32xf32>
    %114 = arith.addf %112, %113 : vector<8x32xf32>
    %115 = math.tanh %114 : vector<8x32xf32>
    %116 = arith.mulf %111, %115 : vector<8x32xf32>
    %c32 = arith.constant 32 : index
    %c0_24 = arith.constant 0 : index
    %117 = vector.load %arg5[%c32, %c0_24] : memref<64x32xf32, #tpu.memory_space<vmem>>, vector<8x32xf32>
    tpu.vector_store %arg5[%c32, %c0_24], %116 {strides = array<i32>} : memref<64x32xf32, #tpu.memory_space<vmem>>, vector<8x32xf32>,
    %118 = vector.extract_strided_slice %10 {offsets = [40, 0], sizes = [8, 128], strides = [1, 1]} : vector<64x128xf32> to vector<8x128xf32>
    %119 = arith.truncf %116 : vector<8x32xf32> to vector<8x32xbf16>
    %cst_25 = arith.constant dense<0.000000e+00> : vector<8x128xf32>
    %120 = tpu.matmul %119, %6, %cst_25 {dimension_numbers = #tpu.dot_dimension_numbers<[1], [0], [0], [1], [0, 0, 1, 1], [], []>} : vector<8x32xbf16>, vector<32x128xbf16>, vector<8x128xf32> -> vector<8x128xf32>
    %121 = arith.addf %118, %120 : vector<8x128xf32>
    %122 = vector.extract_strided_slice %121 {offsets = [0, 0], sizes = [8, 96], strides = [1, 1]} : vector<8x128xf32> to vector<8x96xf32>
    %123 = arith.negf %122 : vector<8x96xf32>
    %124 = math.exp %123 : vector<8x96xf32>
    %cst_26 = arith.constant 1.000000e+00 : f32
    %125 = vector.broadcast %cst_26 : f32 to vector<8x96xf32>
    %126 = arith.addf %125, %124 : vector<8x96xf32>
    %127 = arith.divf %125, %126 : vector<8x96xf32>
    %128 = vector.extract_strided_slice %121 {offsets = [0, 96], sizes = [8, 32], strides = [1, 1]} : vector<8x128xf32> to vector<8x32xf32>
    %129 = math.tanh %128 : vector<8x32xf32>
    %130 = vector.extract_strided_slice %127 {offsets = [0, 0], sizes = [8, 32], strides = [1, 1]} : vector<8x96xf32> to vector<8x32xf32>
    %131 = vector.extract_strided_slice %127 {offsets = [0, 32], sizes = [8, 32], strides = [1, 1]} : vector<8x96xf32> to vector<8x32xf32>
    %132 = vector.extract_strided_slice %127 {offsets = [0, 64], sizes = [8, 32], strides = [1, 1]} : vector<8x96xf32> to vector<8x32xf32>
    %133 = arith.mulf %131, %114 : vector<8x32xf32>
    %134 = arith.mulf %130, %129 : vector<8x32xf32>
    %135 = arith.addf %133, %134 : vector<8x32xf32>
    %136 = math.tanh %135 : vector<8x32xf32>
    %137 = arith.mulf %132, %136 : vector<8x32xf32>
    %c40 = arith.constant 40 : index
    %c0_27 = arith.constant 0 : index
    %138 = vector.load %arg5[%c40, %c0_27] : memref<64x32xf32, #tpu.memory_space<vmem>>, vector<8x32xf32>
    tpu.vector_store %arg5[%c40, %c0_27], %137 {strides = array<i32>} : memref<64x32xf32, #tpu.memory_space<vmem>>, vector<8x32xf32>,
    %139 = vector.extract_strided_slice %10 {offsets = [48, 0], sizes = [8, 128], strides = [1, 1]} : vector<64x128xf32> to vector<8x128xf32>
    %140 = arith.truncf %137 : vector<8x32xf32> to vector<8x32xbf16>
    %cst_28 = arith.constant dense<0.000000e+00> : vector<8x128xf32>
    %141 = tpu.matmul %140, %6, %cst_28 {dimension_numbers = #tpu.dot_dimension_numbers<[1], [0], [0], [1], [0, 0, 1, 1], [], []>} : vector<8x32xbf16>, vector<32x128xbf16>, vector<8x128xf32> -> vector<8x128xf32>
    %142 = arith.addf %139, %141 : vector<8x128xf32>
    %143 = vector.extract_strided_slice %142 {offsets = [0, 0], sizes = [8, 96], strides = [1, 1]} : vector<8x128xf32> to vector<8x96xf32>
    %144 = arith.negf %143 : vector<8x96xf32>
    %145 = math.exp %144 : vector<8x96xf32>
    %cst_29 = arith.constant 1.000000e+00 : f32
    %146 = vector.broadcast %cst_29 : f32 to vector<8x96xf32>
    %147 = arith.addf %146, %145 : vector<8x96xf32>
    %148 = arith.divf %146, %147 : vector<8x96xf32>
    %149 = vector.extract_strided_slice %142 {offsets = [0, 96], sizes = [8, 32], strides = [1, 1]} : vector<8x128xf32> to vector<8x32xf32>
    %150 = math.tanh %149 : vector<8x32xf32>
    %151 = vector.extract_strided_slice %148 {offsets = [0, 0], sizes = [8, 32], strides = [1, 1]} : vector<8x96xf32> to vector<8x32xf32>
    %152 = vector.extract_strided_slice %148 {offsets = [0, 32], sizes = [8, 32], strides = [1, 1]} : vector<8x96xf32> to vector<8x32xf32>
    %153 = vector.extract_strided_slice %148 {offsets = [0, 64], sizes = [8, 32], strides = [1, 1]} : vector<8x96xf32> to vector<8x32xf32>
    %154 = arith.mulf %152, %135 : vector<8x32xf32>
    %155 = arith.mulf %151, %150 : vector<8x32xf32>
    %156 = arith.addf %154, %155 : vector<8x32xf32>
    %157 = math.tanh %156 : vector<8x32xf32>
    %158 = arith.mulf %153, %157 : vector<8x32xf32>
    %c48 = arith.constant 48 : index
    %c0_30 = arith.constant 0 : index
    %159 = vector.load %arg5[%c48, %c0_30] : memref<64x32xf32, #tpu.memory_space<vmem>>, vector<8x32xf32>
    tpu.vector_store %arg5[%c48, %c0_30], %158 {strides = array<i32>} : memref<64x32xf32, #tpu.memory_space<vmem>>, vector<8x32xf32>,
    %160 = vector.extract_strided_slice %10 {offsets = [56, 0], sizes = [8, 128], strides = [1, 1]} : vector<64x128xf32> to vector<8x128xf32>
    %161 = arith.truncf %158 : vector<8x32xf32> to vector<8x32xbf16>
    %cst_31 = arith.constant dense<0.000000e+00> : vector<8x128xf32>
    %162 = tpu.matmul %161, %6, %cst_31 {dimension_numbers = #tpu.dot_dimension_numbers<[1], [0], [0], [1], [0, 0, 1, 1], [], []>} : vector<8x32xbf16>, vector<32x128xbf16>, vector<8x128xf32> -> vector<8x128xf32>
    %163 = arith.addf %160, %162 : vector<8x128xf32>
    %164 = vector.extract_strided_slice %163 {offsets = [0, 0], sizes = [8, 96], strides = [1, 1]} : vector<8x128xf32> to vector<8x96xf32>
    %165 = arith.negf %164 : vector<8x96xf32>
    %166 = math.exp %165 : vector<8x96xf32>
    %cst_32 = arith.constant 1.000000e+00 : f32
    %167 = vector.broadcast %cst_32 : f32 to vector<8x96xf32>
    %168 = arith.addf %167, %166 : vector<8x96xf32>
    %169 = arith.divf %167, %168 : vector<8x96xf32>
    %170 = vector.extract_strided_slice %163 {offsets = [0, 96], sizes = [8, 32], strides = [1, 1]} : vector<8x128xf32> to vector<8x32xf32>
    %171 = math.tanh %170 : vector<8x32xf32>
    %172 = vector.extract_strided_slice %169 {offsets = [0, 0], sizes = [8, 32], strides = [1, 1]} : vector<8x96xf32> to vector<8x32xf32>
    %173 = vector.extract_strided_slice %169 {offsets = [0, 32], sizes = [8, 32], strides = [1, 1]} : vector<8x96xf32> to vector<8x32xf32>
    %174 = vector.extract_strided_slice %169 {offsets = [0, 64], sizes = [8, 32], strides = [1, 1]} : vector<8x96xf32> to vector<8x32xf32>
    %175 = arith.mulf %173, %156 : vector<8x32xf32>
    %176 = arith.mulf %172, %171 : vector<8x32xf32>
    %177 = arith.addf %175, %176 : vector<8x32xf32>
    %178 = math.tanh %177 : vector<8x32xf32>
    %179 = arith.mulf %174, %178 : vector<8x32xf32>
    %c56 = arith.constant 56 : index
    %c0_33 = arith.constant 0 : index
    %180 = vector.load %arg5[%c56, %c0_33] : memref<64x32xf32, #tpu.memory_space<vmem>>, vector<8x32xf32>
    tpu.vector_store %arg5[%c56, %c0_33], %179 {strides = array<i32>} : memref<64x32xf32, #tpu.memory_space<vmem>>, vector<8x32xf32>,
    %c0_34 = arith.constant 0 : index
    %c0_35 = arith.constant 0 : index
    %181 = vector.load %arg5[%c0_34, %c0_35] : memref<64x32xf32, #tpu.memory_space<vmem>>, vector<64x32xf32>
    %182 = arith.truncf %181 : vector<64x32xf32> to vector<64x32xbf16>
    %183 = vector.extract_strided_slice %2 {offsets = [48, 0], sizes = [32, 128], strides = [1, 1]} : vector<112x128xbf16> to vector<32x128xbf16>
    %184 = vector.extract_strided_slice %2 {offsets = [80, 0], sizes = [32, 128], strides = [1, 1]} : vector<112x128xbf16> to vector<32x128xbf16>
    %185 = vector.extract_strided_slice %4 {offsets = [1, 0], sizes = [1, 128], strides = [1, 1]} : vector<8x128xf32> to vector<1x128xf32>
    %cst_36 = arith.constant dense<0.000000e+00> : vector<64x128xf32>
    %186 = tpu.matmul %182, %183, %cst_36 {dimension_numbers = #tpu.dot_dimension_numbers<[1], [0], [0], [1], [0, 0, 1, 1], [], []>} : vector<64x32xbf16>, vector<32x128xbf16>, vector<64x128xf32> -> vector<64x128xf32>
    %187 = vector.broadcast %185 : vector<1x128xf32> to vector<64x128xf32>
    %188 = arith.addf %186, %187 : vector<64x128xf32>
    %cst_37 = arith.constant 0.000000e+00 : f32
    %189 = vector.broadcast %cst_37 : f32 to vector<8x32xf32>
    %cst_38 = arith.constant 0.000000e+00 : f32
    %190 = vector.broadcast %cst_38 : f32 to vector<8x32xf32>
    %191 = vector.extract_strided_slice %188 {offsets = [0, 0], sizes = [8, 128], strides = [1, 1]} : vector<64x128xf32> to vector<8x128xf32>
    %192 = arith.truncf %189 : vector<8x32xf32> to vector<8x32xbf16>
    %cst_39 = arith.constant dense<0.000000e+00> : vector<8x128xf32>
    %193 = tpu.matmul %192, %184, %cst_39 {dimension_numbers = #tpu.dot_dimension_numbers<[1], [0], [0], [1], [0, 0, 1, 1], [], []>} : vector<8x32xbf16>, vector<32x128xbf16>, vector<8x128xf32> -> vector<8x128xf32>
    %194 = arith.addf %191, %193 : vector<8x128xf32>
    %195 = vector.extract_strided_slice %194 {offsets = [0, 0], sizes = [8, 96], strides = [1, 1]} : vector<8x128xf32> to vector<8x96xf32>
    %196 = arith.negf %195 : vector<8x96xf32>
    %197 = math.exp %196 : vector<8x96xf32>
    %cst_40 = arith.constant 1.000000e+00 : f32
    %198 = vector.broadcast %cst_40 : f32 to vector<8x96xf32>
    %199 = arith.addf %198, %197 : vector<8x96xf32>
    %200 = arith.divf %198, %199 : vector<8x96xf32>
    %201 = vector.extract_strided_slice %194 {offsets = [0, 96], sizes = [8, 32], strides = [1, 1]} : vector<8x128xf32> to vector<8x32xf32>
    %202 = math.tanh %201 : vector<8x32xf32>
    %203 = vector.extract_strided_slice %200 {offsets = [0, 0], sizes = [8, 32], strides = [1, 1]} : vector<8x96xf32> to vector<8x32xf32>
    %204 = vector.extract_strided_slice %200 {offsets = [0, 32], sizes = [8, 32], strides = [1, 1]} : vector<8x96xf32> to vector<8x32xf32>
    %205 = vector.extract_strided_slice %200 {offsets = [0, 64], sizes = [8, 32], strides = [1, 1]} : vector<8x96xf32> to vector<8x32xf32>
    %206 = arith.mulf %204, %190 : vector<8x32xf32>
    %207 = arith.mulf %203, %202 : vector<8x32xf32>
    %208 = arith.addf %206, %207 : vector<8x32xf32>
    %209 = math.tanh %208 : vector<8x32xf32>
    %210 = arith.mulf %205, %209 : vector<8x32xf32>
    %211 = vector.extract_strided_slice %188 {offsets = [8, 0], sizes = [8, 128], strides = [1, 1]} : vector<64x128xf32> to vector<8x128xf32>
    %212 = arith.truncf %210 : vector<8x32xf32> to vector<8x32xbf16>
    %cst_41 = arith.constant dense<0.000000e+00> : vector<8x128xf32>
    %213 = tpu.matmul %212, %184, %cst_41 {dimension_numbers = #tpu.dot_dimension_numbers<[1], [0], [0], [1], [0, 0, 1, 1], [], []>} : vector<8x32xbf16>, vector<32x128xbf16>, vector<8x128xf32> -> vector<8x128xf32>
    %214 = arith.addf %211, %213 : vector<8x128xf32>
    %215 = vector.extract_strided_slice %214 {offsets = [0, 0], sizes = [8, 96], strides = [1, 1]} : vector<8x128xf32> to vector<8x96xf32>
    %216 = arith.negf %215 : vector<8x96xf32>
    %217 = math.exp %216 : vector<8x96xf32>
    %cst_42 = arith.constant 1.000000e+00 : f32
    %218 = vector.broadcast %cst_42 : f32 to vector<8x96xf32>
    %219 = arith.addf %218, %217 : vector<8x96xf32>
    %220 = arith.divf %218, %219 : vector<8x96xf32>
    %221 = vector.extract_strided_slice %214 {offsets = [0, 96], sizes = [8, 32], strides = [1, 1]} : vector<8x128xf32> to vector<8x32xf32>
    %222 = math.tanh %221 : vector<8x32xf32>
    %223 = vector.extract_strided_slice %220 {offsets = [0, 0], sizes = [8, 32], strides = [1, 1]} : vector<8x96xf32> to vector<8x32xf32>
    %224 = vector.extract_strided_slice %220 {offsets = [0, 32], sizes = [8, 32], strides = [1, 1]} : vector<8x96xf32> to vector<8x32xf32>
    %225 = vector.extract_strided_slice %220 {offsets = [0, 64], sizes = [8, 32], strides = [1, 1]} : vector<8x96xf32> to vector<8x32xf32>
    %226 = arith.mulf %224, %208 : vector<8x32xf32>
    %227 = arith.mulf %223, %222 : vector<8x32xf32>
    %228 = arith.addf %226, %227 : vector<8x32xf32>
    %229 = math.tanh %228 : vector<8x32xf32>
    %230 = arith.mulf %225, %229 : vector<8x32xf32>
    %231 = vector.extract_strided_slice %188 {offsets = [16, 0], sizes = [8, 128], strides = [1, 1]} : vector<64x128xf32> to vector<8x128xf32>
    %232 = arith.truncf %230 : vector<8x32xf32> to vector<8x32xbf16>
    %cst_43 = arith.constant dense<0.000000e+00> : vector<8x128xf32>
    %233 = tpu.matmul %232, %184, %cst_43 {dimension_numbers = #tpu.dot_dimension_numbers<[1], [0], [0], [1], [0, 0, 1, 1], [], []>} : vector<8x32xbf16>, vector<32x128xbf16>, vector<8x128xf32> -> vector<8x128xf32>
    %234 = arith.addf %231, %233 : vector<8x128xf32>
    %235 = vector.extract_strided_slice %234 {offsets = [0, 0], sizes = [8, 96], strides = [1, 1]} : vector<8x128xf32> to vector<8x96xf32>
    %236 = arith.negf %235 : vector<8x96xf32>
    %237 = math.exp %236 : vector<8x96xf32>
    %cst_44 = arith.constant 1.000000e+00 : f32
    %238 = vector.broadcast %cst_44 : f32 to vector<8x96xf32>
    %239 = arith.addf %238, %237 : vector<8x96xf32>
    %240 = arith.divf %238, %239 : vector<8x96xf32>
    %241 = vector.extract_strided_slice %234 {offsets = [0, 96], sizes = [8, 32], strides = [1, 1]} : vector<8x128xf32> to vector<8x32xf32>
    %242 = math.tanh %241 : vector<8x32xf32>
    %243 = vector.extract_strided_slice %240 {offsets = [0, 0], sizes = [8, 32], strides = [1, 1]} : vector<8x96xf32> to vector<8x32xf32>
    %244 = vector.extract_strided_slice %240 {offsets = [0, 32], sizes = [8, 32], strides = [1, 1]} : vector<8x96xf32> to vector<8x32xf32>
    %245 = vector.extract_strided_slice %240 {offsets = [0, 64], sizes = [8, 32], strides = [1, 1]} : vector<8x96xf32> to vector<8x32xf32>
    %246 = arith.mulf %244, %228 : vector<8x32xf32>
    %247 = arith.mulf %243, %242 : vector<8x32xf32>
    %248 = arith.addf %246, %247 : vector<8x32xf32>
    %249 = math.tanh %248 : vector<8x32xf32>
    %250 = arith.mulf %245, %249 : vector<8x32xf32>
    %251 = vector.extract_strided_slice %188 {offsets = [24, 0], sizes = [8, 128], strides = [1, 1]} : vector<64x128xf32> to vector<8x128xf32>
    %252 = arith.truncf %250 : vector<8x32xf32> to vector<8x32xbf16>
    %cst_45 = arith.constant dense<0.000000e+00> : vector<8x128xf32>
    %253 = tpu.matmul %252, %184, %cst_45 {dimension_numbers = #tpu.dot_dimension_numbers<[1], [0], [0], [1], [0, 0, 1, 1], [], []>} : vector<8x32xbf16>, vector<32x128xbf16>, vector<8x128xf32> -> vector<8x128xf32>
    %254 = arith.addf %251, %253 : vector<8x128xf32>
    %255 = vector.extract_strided_slice %254 {offsets = [0, 0], sizes = [8, 96], strides = [1, 1]} : vector<8x128xf32> to vector<8x96xf32>
    %256 = arith.negf %255 : vector<8x96xf32>
    %257 = math.exp %256 : vector<8x96xf32>
    %cst_46 = arith.constant 1.000000e+00 : f32
    %258 = vector.broadcast %cst_46 : f32 to vector<8x96xf32>
    %259 = arith.addf %258, %257 : vector<8x96xf32>
    %260 = arith.divf %258, %259 : vector<8x96xf32>
    %261 = vector.extract_strided_slice %254 {offsets = [0, 96], sizes = [8, 32], strides = [1, 1]} : vector<8x128xf32> to vector<8x32xf32>
    %262 = math.tanh %261 : vector<8x32xf32>
    %263 = vector.extract_strided_slice %260 {offsets = [0, 0], sizes = [8, 32], strides = [1, 1]} : vector<8x96xf32> to vector<8x32xf32>
    %264 = vector.extract_strided_slice %260 {offsets = [0, 32], sizes = [8, 32], strides = [1, 1]} : vector<8x96xf32> to vector<8x32xf32>
    %265 = vector.extract_strided_slice %260 {offsets = [0, 64], sizes = [8, 32], strides = [1, 1]} : vector<8x96xf32> to vector<8x32xf32>
    %266 = arith.mulf %264, %248 : vector<8x32xf32>
    %267 = arith.mulf %263, %262 : vector<8x32xf32>
    %268 = arith.addf %266, %267 : vector<8x32xf32>
    %269 = math.tanh %268 : vector<8x32xf32>
    %270 = arith.mulf %265, %269 : vector<8x32xf32>
    %271 = vector.extract_strided_slice %188 {offsets = [32, 0], sizes = [8, 128], strides = [1, 1]} : vector<64x128xf32> to vector<8x128xf32>
    %272 = arith.truncf %270 : vector<8x32xf32> to vector<8x32xbf16>
    %cst_47 = arith.constant dense<0.000000e+00> : vector<8x128xf32>
    %273 = tpu.matmul %272, %184, %cst_47 {dimension_numbers = #tpu.dot_dimension_numbers<[1], [0], [0], [1], [0, 0, 1, 1], [], []>} : vector<8x32xbf16>, vector<32x128xbf16>, vector<8x128xf32> -> vector<8x128xf32>
    %274 = arith.addf %271, %273 : vector<8x128xf32>
    %275 = vector.extract_strided_slice %274 {offsets = [0, 0], sizes = [8, 96], strides = [1, 1]} : vector<8x128xf32> to vector<8x96xf32>
    %276 = arith.negf %275 : vector<8x96xf32>
    %277 = math.exp %276 : vector<8x96xf32>
    %cst_48 = arith.constant 1.000000e+00 : f32
    %278 = vector.broadcast %cst_48 : f32 to vector<8x96xf32>
    %279 = arith.addf %278, %277 : vector<8x96xf32>
    %280 = arith.divf %278, %279 : vector<8x96xf32>
    %281 = vector.extract_strided_slice %274 {offsets = [0, 96], sizes = [8, 32], strides = [1, 1]} : vector<8x128xf32> to vector<8x32xf32>
    %282 = math.tanh %281 : vector<8x32xf32>
    %283 = vector.extract_strided_slice %280 {offsets = [0, 0], sizes = [8, 32], strides = [1, 1]} : vector<8x96xf32> to vector<8x32xf32>
    %284 = vector.extract_strided_slice %280 {offsets = [0, 32], sizes = [8, 32], strides = [1, 1]} : vector<8x96xf32> to vector<8x32xf32>
    %285 = vector.extract_strided_slice %280 {offsets = [0, 64], sizes = [8, 32], strides = [1, 1]} : vector<8x96xf32> to vector<8x32xf32>
    %286 = arith.mulf %284, %268 : vector<8x32xf32>
    %287 = arith.mulf %283, %282 : vector<8x32xf32>
    %288 = arith.addf %286, %287 : vector<8x32xf32>
    %289 = math.tanh %288 : vector<8x32xf32>
    %290 = arith.mulf %285, %289 : vector<8x32xf32>
    %291 = vector.extract_strided_slice %188 {offsets = [40, 0], sizes = [8, 128], strides = [1, 1]} : vector<64x128xf32> to vector<8x128xf32>
    %292 = arith.truncf %290 : vector<8x32xf32> to vector<8x32xbf16>
    %cst_49 = arith.constant dense<0.000000e+00> : vector<8x128xf32>
    %293 = tpu.matmul %292, %184, %cst_49 {dimension_numbers = #tpu.dot_dimension_numbers<[1], [0], [0], [1], [0, 0, 1, 1], [], []>} : vector<8x32xbf16>, vector<32x128xbf16>, vector<8x128xf32> -> vector<8x128xf32>
    %294 = arith.addf %291, %293 : vector<8x128xf32>
    %295 = vector.extract_strided_slice %294 {offsets = [0, 0], sizes = [8, 96], strides = [1, 1]} : vector<8x128xf32> to vector<8x96xf32>
    %296 = arith.negf %295 : vector<8x96xf32>
    %297 = math.exp %296 : vector<8x96xf32>
    %cst_50 = arith.constant 1.000000e+00 : f32
    %298 = vector.broadcast %cst_50 : f32 to vector<8x96xf32>
    %299 = arith.addf %298, %297 : vector<8x96xf32>
    %300 = arith.divf %298, %299 : vector<8x96xf32>
    %301 = vector.extract_strided_slice %294 {offsets = [0, 96], sizes = [8, 32], strides = [1, 1]} : vector<8x128xf32> to vector<8x32xf32>
    %302 = math.tanh %301 : vector<8x32xf32>
    %303 = vector.extract_strided_slice %300 {offsets = [0, 0], sizes = [8, 32], strides = [1, 1]} : vector<8x96xf32> to vector<8x32xf32>
    %304 = vector.extract_strided_slice %300 {offsets = [0, 32], sizes = [8, 32], strides = [1, 1]} : vector<8x96xf32> to vector<8x32xf32>
    %305 = vector.extract_strided_slice %300 {offsets = [0, 64], sizes = [8, 32], strides = [1, 1]} : vector<8x96xf32> to vector<8x32xf32>
    %306 = arith.mulf %304, %288 : vector<8x32xf32>
    %307 = arith.mulf %303, %302 : vector<8x32xf32>
    %308 = arith.addf %306, %307 : vector<8x32xf32>
    %309 = math.tanh %308 : vector<8x32xf32>
    %310 = arith.mulf %305, %309 : vector<8x32xf32>
    %311 = vector.extract_strided_slice %188 {offsets = [48, 0], sizes = [8, 128], strides = [1, 1]} : vector<64x128xf32> to vector<8x128xf32>
    %312 = arith.truncf %310 : vector<8x32xf32> to vector<8x32xbf16>
    %cst_51 = arith.constant dense<0.000000e+00> : vector<8x128xf32>
    %313 = tpu.matmul %312, %184, %cst_51 {dimension_numbers = #tpu.dot_dimension_numbers<[1], [0], [0], [1], [0, 0, 1, 1], [], []>} : vector<8x32xbf16>, vector<32x128xbf16>, vector<8x128xf32> -> vector<8x128xf32>
    %314 = arith.addf %311, %313 : vector<8x128xf32>
    %315 = vector.extract_strided_slice %314 {offsets = [0, 0], sizes = [8, 96], strides = [1, 1]} : vector<8x128xf32> to vector<8x96xf32>
    %316 = arith.negf %315 : vector<8x96xf32>
    %317 = math.exp %316 : vector<8x96xf32>
    %cst_52 = arith.constant 1.000000e+00 : f32
    %318 = vector.broadcast %cst_52 : f32 to vector<8x96xf32>
    %319 = arith.addf %318, %317 : vector<8x96xf32>
    %320 = arith.divf %318, %319 : vector<8x96xf32>
    %321 = vector.extract_strided_slice %314 {offsets = [0, 96], sizes = [8, 32], strides = [1, 1]} : vector<8x128xf32> to vector<8x32xf32>
    %322 = math.tanh %321 : vector<8x32xf32>
    %323 = vector.extract_strided_slice %320 {offsets = [0, 0], sizes = [8, 32], strides = [1, 1]} : vector<8x96xf32> to vector<8x32xf32>
    %324 = vector.extract_strided_slice %320 {offsets = [0, 32], sizes = [8, 32], strides = [1, 1]} : vector<8x96xf32> to vector<8x32xf32>
    %325 = vector.extract_strided_slice %320 {offsets = [0, 64], sizes = [8, 32], strides = [1, 1]} : vector<8x96xf32> to vector<8x32xf32>
    %326 = arith.mulf %324, %308 : vector<8x32xf32>
    %327 = arith.mulf %323, %322 : vector<8x32xf32>
    %328 = arith.addf %326, %327 : vector<8x32xf32>
    %329 = math.tanh %328 : vector<8x32xf32>
    %330 = arith.mulf %325, %329 : vector<8x32xf32>
    %331 = vector.extract_strided_slice %188 {offsets = [56, 0], sizes = [8, 128], strides = [1, 1]} : vector<64x128xf32> to vector<8x128xf32>
    %332 = arith.truncf %330 : vector<8x32xf32> to vector<8x32xbf16>
    %cst_53 = arith.constant dense<0.000000e+00> : vector<8x128xf32>
    %333 = tpu.matmul %332, %184, %cst_53 {dimension_numbers = #tpu.dot_dimension_numbers<[1], [0], [0], [1], [0, 0, 1, 1], [], []>} : vector<8x32xbf16>, vector<32x128xbf16>, vector<8x128xf32> -> vector<8x128xf32>
    %334 = arith.addf %331, %333 : vector<8x128xf32>
    %335 = vector.extract_strided_slice %334 {offsets = [0, 0], sizes = [8, 96], strides = [1, 1]} : vector<8x128xf32> to vector<8x96xf32>
    %336 = arith.negf %335 : vector<8x96xf32>
    %337 = math.exp %336 : vector<8x96xf32>
    %cst_54 = arith.constant 1.000000e+00 : f32
    %338 = vector.broadcast %cst_54 : f32 to vector<8x96xf32>
    %339 = arith.addf %338, %337 : vector<8x96xf32>
    %340 = arith.divf %338, %339 : vector<8x96xf32>
    %341 = vector.extract_strided_slice %334 {offsets = [0, 96], sizes = [8, 32], strides = [1, 1]} : vector<8x128xf32> to vector<8x32xf32>
    %342 = math.tanh %341 : vector<8x32xf32>
    %343 = vector.extract_strided_slice %340 {offsets = [0, 0], sizes = [8, 32], strides = [1, 1]} : vector<8x96xf32> to vector<8x32xf32>
    %344 = vector.extract_strided_slice %340 {offsets = [0, 32], sizes = [8, 32], strides = [1, 1]} : vector<8x96xf32> to vector<8x32xf32>
    %345 = vector.extract_strided_slice %340 {offsets = [0, 64], sizes = [8, 32], strides = [1, 1]} : vector<8x96xf32> to vector<8x32xf32>
    %346 = arith.mulf %344, %328 : vector<8x32xf32>
    %347 = arith.mulf %343, %342 : vector<8x32xf32>
    %348 = arith.addf %346, %347 : vector<8x32xf32>
    %349 = math.tanh %348 : vector<8x32xf32>
    %350 = arith.mulf %345, %349 : vector<8x32xf32>
    %351 = vector.extract_strided_slice %3 {offsets = [0, 0], sizes = [32, 32], strides = [1, 1]} : vector<208x32xbf16> to vector<32x32xbf16>
    %352 = vector.extract_strided_slice %3 {offsets = [32, 0], sizes = [16, 32], strides = [1, 1]} : vector<208x32xbf16> to vector<16x32xbf16>
    %353 = vector.extract_strided_slice %1 {offsets = [56, 0], sizes = [8, 16], strides = [1, 1]} : vector<64x16xbf16> to vector<8x16xbf16>
    %354 = arith.truncf %350 : vector<8x32xf32> to vector<8x32xbf16>
    %cst_55 = arith.constant dense<0.000000e+00> : vector<8x32xf32>
    %355 = tpu.matmul %354, %351, %cst_55 {dimension_numbers = #tpu.dot_dimension_numbers<[1], [0], [0], [1], [0, 0, 1, 1], [], []>} : vector<8x32xbf16>, vector<32x32xbf16>, vector<8x32xf32> -> vector<8x32xf32>
    %cst_56 = arith.constant dense<0.000000e+00> : vector<8x32xf32>
    %356 = tpu.matmul %353, %352, %cst_56 {dimension_numbers = #tpu.dot_dimension_numbers<[1], [0], [0], [1], [0, 0, 1, 1], [], []>} : vector<8x16xbf16>, vector<16x32xbf16>, vector<8x32xf32> -> vector<8x32xf32>
    %357 = arith.addf %355, %356 : vector<8x32xf32>
    %358 = vector.extract_strided_slice %4 {offsets = [2, 0], sizes = [1, 32], strides = [1, 1]} : vector<8x128xf32> to vector<1x32xf32>
    %359 = vector.broadcast %358 : vector<1x32xf32> to vector<8x32xf32>
    %360 = arith.addf %357, %359 : vector<8x32xf32>
    %cst_57 = arith.constant 0.000000e+00 : f32
    %361 = vector.broadcast %cst_57 : f32 to vector<8x32xf32>
    %362 = arith.maximumf %360, %361 : vector<8x32xf32>
    %363 = vector.extract_strided_slice %3 {offsets = [48, 0], sizes = [32, 32], strides = [1, 1]} : vector<208x32xbf16> to vector<32x32xbf16>
    %364 = vector.extract_strided_slice %4 {offsets = [3, 0], sizes = [1, 32], strides = [1, 1]} : vector<8x128xf32> to vector<1x32xf32>
    %365 = arith.truncf %362 : vector<8x32xf32> to vector<8x32xbf16>
    %cst_58 = arith.constant dense<0.000000e+00> : vector<8x32xf32>
    %366 = tpu.matmul %365, %363, %cst_58 {dimension_numbers = #tpu.dot_dimension_numbers<[1], [0], [0], [1], [0, 0, 1, 1], [], []>} : vector<8x32xbf16>, vector<32x32xbf16>, vector<8x32xf32> -> vector<8x32xf32>
    %367 = vector.broadcast %364 : vector<1x32xf32> to vector<8x32xf32>
    %368 = arith.addf %366, %367 : vector<8x32xf32>
    %cst_59 = arith.constant 0.000000e+00 : f32
    %369 = vector.broadcast %cst_59 : f32 to vector<8x32xf32>
    %370 = arith.maximumf %368, %369 : vector<8x32xf32>
    %371 = vector.extract_strided_slice %3 {offsets = [80, 0], sizes = [32, 32], strides = [1, 1]} : vector<208x32xbf16> to vector<32x32xbf16>
    %372 = vector.extract_strided_slice %4 {offsets = [4, 0], sizes = [1, 32], strides = [1, 1]} : vector<8x128xf32> to vector<1x32xf32>
    %373 = arith.truncf %370 : vector<8x32xf32> to vector<8x32xbf16>
    %cst_60 = arith.constant dense<0.000000e+00> : vector<8x32xf32>
    %374 = tpu.matmul %373, %371, %cst_60 {dimension_numbers = #tpu.dot_dimension_numbers<[1], [0], [0], [1], [0, 0, 1, 1], [], []>} : vector<8x32xbf16>, vector<32x32xbf16>, vector<8x32xf32> -> vector<8x32xf32>
    %375 = vector.broadcast %372 : vector<1x32xf32> to vector<8x32xf32>
    %376 = arith.addf %374, %375 : vector<8x32xf32>
    %cst_61 = arith.constant 0.000000e+00 : f32
    %377 = vector.broadcast %cst_61 : f32 to vector<8x32xf32>
    %378 = arith.maximumf %376, %377 : vector<8x32xf32>
    %379 = vector.extract_strided_slice %3 {offsets = [112, 0], sizes = [32, 32], strides = [1, 1]} : vector<208x32xbf16> to vector<32x32xbf16>
    %380 = vector.extract_strided_slice %4 {offsets = [5, 0], sizes = [1, 32], strides = [1, 1]} : vector<8x128xf32> to vector<1x32xf32>
    %381 = arith.truncf %378 : vector<8x32xf32> to vector<8x32xbf16>
    %cst_62 = arith.constant dense<0.000000e+00> : vector<8x32xf32>
    %382 = tpu.matmul %381, %379, %cst_62 {dimension_numbers = #tpu.dot_dimension_numbers<[1], [0], [0], [1], [0, 0, 1, 1], [], []>} : vector<8x32xbf16>, vector<32x32xbf16>, vector<8x32xf32> -> vector<8x32xf32>
    %383 = vector.broadcast %380 : vector<1x32xf32> to vector<8x32xf32>
    %384 = arith.addf %382, %383 : vector<8x32xf32>
    %cst_63 = arith.constant 0.000000e+00 : f32
    %385 = vector.broadcast %cst_63 : f32 to vector<8x32xf32>
    %386 = arith.maximumf %384, %385 : vector<8x32xf32>
    %387 = vector.extract_strided_slice %3 {offsets = [144, 0], sizes = [32, 32], strides = [1, 1]} : vector<208x32xbf16> to vector<32x32xbf16>
    %388 = vector.extract_strided_slice %4 {offsets = [6, 0], sizes = [1, 32], strides = [1, 1]} : vector<8x128xf32> to vector<1x32xf32>
    %389 = arith.truncf %386 : vector<8x32xf32> to vector<8x32xbf16>
    %cst_64 = arith.constant dense<0.000000e+00> : vector<8x32xf32>
    %390 = tpu.matmul %389, %387, %cst_64 {dimension_numbers = #tpu.dot_dimension_numbers<[1], [0], [0], [1], [0, 0, 1, 1], [], []>} : vector<8x32xbf16>, vector<32x32xbf16>, vector<8x32xf32> -> vector<8x32xf32>
    %391 = vector.broadcast %388 : vector<1x32xf32> to vector<8x32xf32>
    %392 = arith.addf %390, %391 : vector<8x32xf32>
    %cst_65 = arith.constant 0.000000e+00 : f32
    %393 = vector.broadcast %cst_65 : f32 to vector<8x32xf32>
    %394 = arith.maximumf %392, %393 : vector<8x32xf32>
    %395 = vector.extract_strided_slice %3 {offsets = [176, 0], sizes = [32, 32], strides = [1, 1]} : vector<208x32xbf16> to vector<32x32xbf16>
    %396 = vector.extract_strided_slice %4 {offsets = [7, 0], sizes = [1, 32], strides = [1, 1]} : vector<8x128xf32> to vector<1x32xf32>
    %397 = arith.truncf %394 : vector<8x32xf32> to vector<8x32xbf16>
    %cst_66 = arith.constant dense<0.000000e+00> : vector<8x32xf32>
    %398 = tpu.matmul %397, %395, %cst_66 {dimension_numbers = #tpu.dot_dimension_numbers<[1], [0], [0], [1], [0, 0, 1, 1], [], []>} : vector<8x32xbf16>, vector<32x32xbf16>, vector<8x32xf32> -> vector<8x32xf32>
    %399 = vector.broadcast %396 : vector<1x32xf32> to vector<8x32xf32>
    %400 = arith.addf %398, %399 : vector<8x32xf32>
    %401 = vector.extract_strided_slice %400 {offsets = [0, 0], sizes = [8, 4], strides = [1, 1]} : vector<8x32xf32> to vector<8x4xf32>
    %c0_67 = arith.constant 0 : index
    %c0_68 = arith.constant 0 : index
    %402 = vector.load %arg4[%c0_67, %c0_68] : memref<8x4xf32, #tpu.memory_space<vmem>>, vector<8x4xf32>
    tpu.vector_store %arg4[%c0_67, %c0_68], %401 {strides = array<i32>} : memref<8x4xf32, #tpu.memory_space<vmem>>, vector<8x4xf32>,
    return
  }
}

</mosaic_0001>

<bundles_post_ra>
// kernel: dfmnet_forward.1
= control target key start
LH: loop header
LB: loop body
LE: loop exit
PB: predicated region body
PF: predicated region fallthrough
CT: control target
= control target key end

     0   :  { %vm102_vm0 = vcmask 130048   ;;  %v1686_v10 = vmov 0   ;;  %s1687_s27 = smov 32   ;;  %s1688_s28 = smov 64   ;;  %vm156_vm5 = vcmask 261120   ;;  %s2038_s1 = inlined_call_operand.vmem [shape: bf16[112,128], index: 1, kind: input, shape index: {}]   ;;  %s2039_s0 = inlined_call_operand.vmem [shape: f32[64,16], index: 0, kind: input, shape index: {}]   ;;  %s2040_s3 = inlined_call_operand.vmem [shape: f32[8,128], index: 3, kind: input, shape index: {}]   ;;  %s2041_s2 = inlined_call_operand.vmem [shape: bf16[208,32], index: 2, kind: input, shape index: {}]   ;;  %s2042_s4 = inlined_call_operand.vmem [shape: f32[8,4], index: 4, kind: output, shape index: {}]  }
   0x1   :  { %v1717_v0 = vld [vmem:[%s2038_s1 + $0x10] sm:$0xff]  ;;  %v1534_v1 = vld [vmem:[%s2038_s1] sm:$0xff]  ;;  %v19_v3 = vld [vmem:[%s2039_s0 + $0x8] sm:$0xff] }
   0x2   :  { %v18_v2 = vld [vmem:[%s2039_s0] sm:$0xff]  ;;  %166 = vmatpush.bf16.msra.mxu1 %v1717_v0  ;;  %122 = vmatpush.bf16.msra.mxu0 %v1534_v1  ;;  %v27_v5 = vpack.c.bf16 %v19_v3, %v19_v3  ;;  %v1732_v6 = vld [vmem:[%s2038_s1 + $0x8] sm:$0xff]  ;;  %v20_v3 = vld [vmem:[%s2039_s0 + $0x10] sm:$0xff] }
   0x3   :  { %v26_v4 = vpack.c.bf16 %v18_v2, %v18_v2  ;;  %229 = vmatpush.bf16.msra.mxu2 %v1717_v0  ;;  %292 = vmatpush.bf16.msra.mxu3 %v1717_v0  ;;  %v1752_v11 = vld [vmem:[%s2040_s3] sm:$0xff] }
   0x4   :  { %v85_v8 = vunpack.c.l.b16 %v27_v5  ;;  %v1755_v12 = vperm.slane %v1752_v11, 0  ;;  %v28_v5 = vpack.c.bf16 %v20_v3, %v20_v3 }
   0x5   :  { %v84_v7 = vunpack.c.l.b16 %v26_v4  ;;  %v21_v4 = vld [vmem:[%s2039_s0 + $0x18] sm:$0xff] }
   0x6   :  { %167 = vmatpush.bf16.msra.mxu1 %v1732_v6 }
   0x7   :  { %v92_v9 = vpack.c.b16 %v85_v8, %v84_v7  ;;  %230 = vmatpush.bf16.msra.mxu2 %v1732_v6  ;;  %293 = vmatpush.bf16.msra.mxu3 %v1732_v6  ;;  %v86_v7 = vunpack.c.l.b16 %v28_v5 }
   0x9   :  { %1413 = vmatmul.msk.bf16.vlgmr.msra.gmra.mxu0 %vm102_vm0, %v92_v9  ;;  %168 = vmatmul.bf16.vlgmr.msra.gmra.mxu1 %v1686_v10 }
   0xa   :  { %355 = vmatpush.bf16.msrb.mxu1 %v1717_v0 }
   0xb   :  { %418 = vmatpush.bf16.msrb.mxu2 %v1717_v0  ;;  %481 = vmatpush.bf16.msrb.mxu3 %v1717_v0 }
   0xe   :  { %356 = vmatpush.bf16.msrb.mxu1 %v1732_v6 }
   0xf   :  { %419 = vmatpush.bf16.msrb.mxu2 %v1732_v6  ;;  %482 = vmatpush.bf16.msrb.mxu3 %v1732_v6 }
  0x12   :  { %544 = vmatpush.bf16.msra.mxu1 %v1717_v0 }
  0x16   :  { %545 = vmatpush.bf16.msra.mxu1 %v1732_v6 }
  0x86   :  { %v124_v13 = vpop.f32.mrf.mxu0  ;;  %v169_v15 = vpop.f32.mrf.mxu1 }
  0x87   :  { %v125_v14 = vadd.f32 %v124_v13, %v1755_v12 }
  0x89   :  { %v173_v16 = vadd.f32 %v169_v15, %v125_v14 }
  0x8b   :  { %1557 = vtanh.f32 %v173_v16  ;;  %v1425_v19 = vmul.f32 -1.442695, %v173_v16 }
  0x8d   :  { %1559 = vpow2.f32 %v1425_v19 }
  0x8e   :  { %v171_v17 = vpop.f32.mrf.mxu1  ;;  %v126_v42 = vpop.f32.mrf.mxu0 }
  0x8f   :  { %v127_v43 = vadd.f32 %v126_v42, %v1755_v12 }
  0x91   :  { %v1558_v18 = vpop.eup %1557 }
  0x92   :  { %196 = vrot.lane.b32.xlu0 %v1558_v18, %s1687_s27 }
  0x93   :  { %v1560_v20 = vpop.eup %1559 }
  0x94   :  { %v177_v21 = vadd.f32 1.0, %v1560_v20 }
  0x96   :  { %1561 = vrcp.f32 %v177_v21  ;;  %v189_v27 = vand.u32 2147483648, %v177_v21  ;;  %vm183_vm2 = vweird.f32 %v177_v21  ;;  %v187_v28 = vand.u32 2147483647, %v177_v21 }
  0x98   :  { %v190_v30 = vor.u32 1.1754944e-38, %v189_v27  ;;  %vm188_vm4 = vcmp.eq.f32.partialorder %v187_v28, 8.507059e+37 }
  0x9c   :  { %v1562_v22 = vpop.eup %1561 }
  0x9d   :  { %v179_v23 = vmul.f32 %v1562_v22, %v177_v21  ;;  %vm184_vm1 = vweird.f32 %v1562_v22 }
  0x9e   :  { %vm185_vm3 = vmor %vm183_vm2, %vm184_vm1 }
  0x9f   :  { %v180_v24 = vsub.f32 1.0, %v179_v23 }
  0xa1   :  { %v181_v25 = vmul.f32 %v1562_v22, %v180_v24 }
  0xa3   :  { %v182_v26 = vadd.f32 %v1562_v22, %v181_v25 }
  0xa5   :  { %v186_v29 = vsel %vm185_vm3, %v1562_v22, %v182_v26 }
  0xa6   :  { %v191_v32 = vsel %vm188_vm4, %v190_v30, %v186_v29 }
  0xa7   :  { %v194_v34 = vmul.f32 0.0, %v191_v32 }
 0x104   :  { %v197_v31 = vpop.permute.xlu0 %196 }
 0x105   :  { %v199_v33 = vmul.f32 %v197_v31, %v191_v32 }
 0x107   :  { %201 = vrot.lane.b32.xlu0 %v199_v33, %s1687_s27 }
 0x179   :  { %v202_v35 = vpop.permute.xlu0 %201 }
 0x17a   :  { %v204_v36 = vadd.f32 %v202_v35, %v194_v34 }
 0x17c   :  { %1563 = vtanh.f32 %v204_v36 }
 0x182   :  { %v1564_v37 = vpop.eup %1563 }
 0x183   :  { %207 = vrot.lane.b32.xlu1 %v1564_v37, %s1687_s27 }
 0x1f5   :  { %v208_v38 = vpop.permute.xlu1 %207 }
 0x1f6   :  { %v1761_v39 = vmul.f32 %v208_v38, %v191_v32 }
 0x1f8   :  { %v216_v40 = vpack.c.bf16 %v1761_v39, %v1761_v39 }
 0x1fa   :  { %218 = vrot.lane.b32.xlu1 %v216_v40, %s1688_s28 }
 0x26c   :  { %v219_v41 = vpop.permute.xlu1 %218 }
 0x26d   :  { %1426 = vmatmul.msk.bf16.vlgmr.msra.gmra.mxu2 %vm156_vm5, %v219_v41 }
 0x26e   :  { %607 = vmatpush.bf16.msra.mxu2 %v1717_v0 }
 0x272   :  { %608 = vmatpush.bf16.msra.mxu2 %v1732_v6  ;;  %v29_v6 = vpack.c.bf16 %v21_v4, %v21_v4 }
 0x274   :  { %v87_v8 = vunpack.c.l.b16 %v29_v6 }
 0x276   :  { %v93_v9 = vpack.c.b16 %v87_v8, %v86_v7  ;;  %v22_v8 = vld [vmem:[%s2039_s0 + $0x20] sm:$0xff] }
 0x278   :  { %1414 = vmatmul.msk.bf16.gmra.mxu0 %vm102_vm0, %v93_v9  ;;  %v23_v9 = vld [vmem:[%s2039_s0 + $0x28] sm:$0xff] }
 0x2f0   :  { %v232_v44 = vpop.f32.mrf.mxu2 }
 0x2f1   :  { %v236_v45 = vadd.f32 %v232_v44, %v127_v43 }
 0x2f3   :  { %1565 = vtanh.f32 %v236_v45  ;;  %v1427_v48 = vmul.f32 -1.442695, %v236_v45 }
 0x2f5   :  { %1567 = vpow2.f32 %v1427_v48  ;;  %v129_v17 = vpop.f32.mrf.mxu0 }
 0x2f6   :  { %v130_v18 = vadd.f32 %v129_v17, %v1755_v12 }
 0x2f8   :  { %v234_v46 = vpop.f32.mrf.mxu2 }
 0x2f9   :  { %v1566_v47 = vpop.eup %1565 }
 0x2fa   :  { %259 = vrot.lane.b32.xlu2 %v1566_v47, %s1687_s27 }
 0x2fb   :  { %v1568_v49 = vpop.eup %1567 }
 0x2fc   :  { %v240_v50 = vadd.f32 1.0, %v1568_v49 }
 0x2fd   :  { %v131_v47 = vpop.f32.mrf.mxu0 }
 0x2fe   :  { %1569 = vrcp.f32 %v240_v50  ;;  %v252_v56 = vand.u32 2147483648, %v240_v50  ;;  %vm246_vm7 = vweird.f32 %v240_v50  ;;  %v250_v57 = vand.u32 2147483647, %v240_v50 }
 0x2ff   :  { %v132_v48 = vadd.f32 %v131_v47, %v1755_v12 }
 0x300   :  { %v253_v59 = vor.u32 1.1754944e-38, %v252_v56  ;;  %vm251_vm9 = vcmp.eq.f32.partialorder %v250_v57, 8.507059e+37 }
 0x304   :  { %v1570_v51 = vpop.eup %1569 }
 0x305   :  { %v242_v52 = vmul.f32 %v1570_v51, %v240_v50  ;;  %vm247_vm6 = vweird.f32 %v1570_v51 }
 0x306   :  { %vm248_vm8 = vmor %vm246_vm7, %vm247_vm6 }
 0x307   :  { %v243_v53 = vsub.f32 1.0, %v242_v52 }
 0x309   :  { %v244_v54 = vmul.f32 %v1570_v51, %v243_v53 }
 0x30b   :  { %v245_v55 = vadd.f32 %v1570_v51, %v244_v54 }
 0x30d   :  { %v249_v58 = vsel %vm248_vm8, %v1570_v51, %v245_v55 }
 0x30e   :  { %v254_v61 = vsel %vm251_vm9, %v253_v59, %v249_v58 }
 0x30f   :  { %v257_v63 = vmul.f32 %v254_v61, %v204_v36 }
 0x354   :  { %v260_v60 = vpop.permute.xlu2 %259 }
 0x355   :  { %v262_v62 = vmul.f32 %v260_v60, %v254_v61 }
 0x357   :  { %264 = vrot.lane.b32.xlu2 %v262_v62, %s1687_s27 }
 0x3b1   :  { %v265_v0 = vpop.permute.xlu2 %264 }
 0x3b2   :  { %v267_v1 = vadd.f32 %v265_v0, %v257_v63 }
 0x3b4   :  { %1571 = vtanh.f32 %v267_v1 }
 0x3ba   :  { %v1572_v2 = vpop.eup %1571 }
 0x3bb   :  { %270 = vrot.lane.b32.xlu0 %v1572_v2, %s1687_s27 }
 0x42d   :  { %v271_v13 = vpop.permute.xlu0 %270 }
 0x42e   :  { %v1780_v14 = vmul.f32 %v271_v13, %v254_v61  ;;  %v30_v13 = vpack.c.bf16 %v22_v8, %v22_v8 }
 0x430   :  { %v279_v15 = vpack.c.bf16 %v1780_v14, %v1780_v14 }
 0x432   :  { %281 = vrot.lane.b32.xlu1 %v279_v15, %s1688_s28  ;;  %v31_v15 = vpack.c.bf16 %v23_v9, %v23_v9 }
 0x434   :  { %v89_v17 = vunpack.c.l.b16 %v31_v15  ;;  %v1538_v15 = vld [vmem:[%s2038_s1 + $0x20] sm:$0xff] }
 0x4a4   :  { %v282_v16 = vpop.permute.xlu1 %281 }
 0x4a5   :  { %1428 = vmatmul.msk.bf16.vlgmr.msra.gmra.mxu3 %vm156_vm5, %v282_v16  ;;  %v88_v16 = vunpack.c.l.b16 %v30_v13 }
 0x4a6   :  { %700 = vmatpush.bf16.msra.mxu3 %v1538_v15 }
 0x528   :  { %v295_v19 = vpop.f32.mrf.mxu3 }
 0x529   :  { %v299_v20 = vadd.f32 %v295_v19, %v130_v18  ;;  %v94_v18 = vpack.c.b16 %v89_v17, %v88_v16  ;;  %v1537_v16 = vld [vmem:[%s2038_s1 + $0x18] sm:$0xff] }
 0x52a   :  { %701 = vmatpush.bf16.msra.mxu3 %v1537_v16 }
 0x52b   :  { %1573 = vtanh.f32 %v299_v20  ;;  %v1429_v23 = vmul.f32 -1.442695, %v299_v20  ;;  %1415 = vmatmul.msk.bf16.gmra.mxu0 %vm102_vm0, %v94_v18 }
 0x52d   :  { %1575 = vpow2.f32 %v1429_v23 }
 0x530   :  { %v297_v21 = vpop.f32.mrf.mxu3 }
 0x531   :  { %v1574_v22 = vpop.eup %1573 }
 0x532   :  { %322 = vrot.lane.b32.xlu2 %v1574_v22, %s1687_s27 }
 0x533   :  { %v1576_v24 = vpop.eup %1575 }
 0x534   :  { %v303_v25 = vadd.f32 1.0, %v1576_v24 }
 0x536   :  { %1577 = vrcp.f32 %v303_v25  ;;  %v315_v31 = vand.u32 2147483648, %v303_v25  ;;  %vm309_vm11 = vweird.f32 %v303_v25  ;;  %v313_v32 = vand.u32 2147483647, %v303_v25 }
 0x538   :  { %v316_v34 = vor.u32 1.1754944e-38, %v315_v31  ;;  %vm314_vm13 = vcmp.eq.f32.partialorder %v313_v32, 8.507059e+37 }
 0x53c   :  { %v1578_v26 = vpop.eup %1577 }
 0x53d   :  { %v305_v27 = vmul.f32 %v1578_v26, %v303_v25  ;;  %vm310_vm10 = vweird.f32 %v1578_v26 }
 0x53e   :  { %vm311_vm12 = vmor %vm309_vm11, %vm310_vm10 }
 0x53f   :  { %v306_v28 = vsub.f32 1.0, %v305_v27 }
 0x541   :  { %v307_v29 = vmul.f32 %v1578_v26, %v306_v28 }
 0x543   :  { %v308_v30 = vadd.f32 %v1578_v26, %v307_v29 }
 0x545   :  { %v312_v33 = vsel %vm311_vm12, %v1578_v26, %v308_v30 }
 0x546   :  { %v317_v36 = vsel %vm314_vm13, %v316_v34, %v312_v33 }
 0x547   :  { %v320_v38 = vmul.f32 %v317_v36, %v267_v1 }
 0x58c   :  { %v323_v35 = vpop.permute.xlu2 %322 }
 0x58d   :  { %v325_v37 = vmul.f32 %v323_v35, %v317_v36 }
 0x58f   :  { %327 = vrot.lane.b32.xlu0 %v325_v37, %s1687_s27 }
 0x5a8   :  { %v134_v23 = vpop.f32.mrf.mxu0 }
 0x5a9   :  { %v135_v24 = vadd.f32 %v134_v23, %v1755_v12 }
 0x601   :  { %v328_v40 = vpop.permute.xlu0 %327 }
 0x602   :  { %v330_v41 = vadd.f32 %v328_v40, %v320_v38 }
 0x604   :  { %1579 = vtanh.f32 %v330_v41 }
 0x60a   :  { %v1580_v42 = vpop.eup %1579 }
 0x60b   :  { %333 = vrot.lane.b32.xlu1 %v1580_v42, %s1687_s27 }
 0x67d   :  { %v334_v43 = vpop.permute.xlu1 %333 }
 0x67e   :  { %v1790_v44 = vmul.f32 %v334_v43, %v317_v36 }
 0x680   :  { %v342_v45 = vpack.c.bf16 %v1790_v44, %v1790_v44 }
 0x682   :  { %344 = vrot.lane.b32.xlu2 %v342_v45, %s1688_s28 }
 0x6dc   :  { %v345_v46 = vpop.permute.xlu2 %344 }
 0x6dd   :  { %1430 = vmatmul.msk.bf16.vlgmr.msrb.gmra.mxu1 %vm156_vm5, %v345_v46 }
 0x75a   :  { %v358_v49 = vpop.f32.mrf.mxu1 }
 0x75b   :  { %v362_v50 = vadd.f32 %v358_v49, %v132_v48 }
 0x75d   :  { %1581 = vtanh.f32 %v362_v50  ;;  %v1431_v53 = vmul.f32 -1.442695, %v362_v50 }
 0x75f   :  { %1583 = vpow2.f32 %v1431_v53 }
 0x762   :  { %v360_v51 = vpop.f32.mrf.mxu1 }
 0x763   :  { %v1582_v52 = vpop.eup %1581 }
 0x764   :  { %385 = vrot.lane.b32.xlu0 %v1582_v52, %s1687_s27 }
 0x765   :  { %v1584_v54 = vpop.eup %1583 }
 0x766   :  { %v366_v55 = vadd.f32 1.0, %v1584_v54  ;;  %v136_v54 = vpop.f32.mrf.mxu0 }
 0x768   :  { %1585 = vrcp.f32 %v366_v55  ;;  %v378_v61 = vand.u32 2147483648, %v366_v55  ;;  %vm372_vm15 = vweird.f32 %v366_v55  ;;  %v376_v62 = vand.u32 2147483647, %v366_v55 }
 0x76a   :  { %v379_v0 = vor.u32 1.1754944e-38, %v378_v61  ;;  %vm377_vm2 = vcmp.eq.f32.partialorder %v376_v62, 8.507059e+37 }
 0x76e   :  { %v1586_v56 = vpop.eup %1585 }
 0x76f   :  { %v368_v57 = vmul.f32 %v1586_v56, %v366_v55  ;;  %vm373_vm14 = vweird.f32 %v1586_v56  ;;  %v137_v55 = vadd.f32 %v136_v54, %v1755_v12 }
 0x770   :  { %vm374_vm1 = vmor %vm372_vm15, %vm373_vm14 }
 0x771   :  { %v369_v58 = vsub.f32 1.0, %v368_v57 }
 0x773   :  { %v370_v59 = vmul.f32 %v1586_v56, %v369_v58 }
 0x775   :  { %v371_v60 = vadd.f32 %v1586_v56, %v370_v59 }
 0x777   :  { %v375_v63 = vsel %vm374_vm1, %v1586_v56, %v371_v60 }
 0x778   :  { %v380_v2 = vsel %vm377_vm2, %v379_v0, %v375_v63 }
 0x779   :  { %v383_v4 = vmul.f32 %v380_v2, %v330_v41 }
 0x7d6   :  { %v386_v1 = vpop.permute.xlu0 %385 }
 0x7d7   :  { %v388_v3 = vmul.f32 %v386_v1, %v380_v2 }
 0x7d9   :  { %390 = vrot.lane.b32.xlu1 %v388_v3, %s1687_s27 }
 0x84b   :  { %v391_v5 = vpop.permute.xlu1 %390 }
 0x84c   :  { %v393_v6 = vadd.f32 %v391_v5, %v383_v4 }
 0x84e   :  { %1587 = vtanh.f32 %v393_v6 }
 0x854   :  { %v1588_v7 = vpop.eup %1587 }
 0x855   :  { %396 = vrot.lane.b32.xlu2 %v1588_v7, %s1687_s27 }
 0x8af   :  { %v397_v19 = vpop.permute.xlu2 %396 }
 0x8b0   :  { %v1807_v20 = vmul.f32 %v397_v19, %v380_v2 }
 0x8b2   :  { %v405_v21 = vpack.c.bf16 %v1807_v20, %v1807_v20 }
 0x8b4   :  { %407 = vrot.lane.b32.xlu0 %v405_v21, %s1688_s28 }
 0x926   :  { %v408_v22 = vpop.permute.xlu0 %407 }
 0x927   :  { %1432 = vmatmul.msk.bf16.vlgmr.msrb.gmra.mxu2 %vm156_vm5, %v408_v22 }
 0x9aa   :  { %v421_v25 = vpop.f32.mrf.mxu2 }
 0x9ab   :  { %v425_v26 = vadd.f32 %v421_v25, %v135_v24 }
 0x9ad   :  { %1589 = vtanh.f32 %v425_v26  ;;  %v1433_v29 = vmul.f32 -1.442695, %v425_v26 }
 0x9af   :  { %1591 = vpow2.f32 %v1433_v29  ;;  %v25_v29 = vld [vmem:[%s2039_s0 + $0x38] sm:$0xff] }
 0x9b2   :  { %v423_v27 = vpop.f32.mrf.mxu2 }
 0x9b3   :  { %v1590_v28 = vpop.eup %1589 }
 0x9b4   :  { %448 = vrot.lane.b32.xlu1 %v1590_v28, %s1687_s27  ;;  %v24_v28 = vld [vmem:[%s2039_s0 + $0x30] sm:$0xff] }
 0x9b5   :  { %v1592_v30 = vpop.eup %1591 }
 0x9b6   :  { %v429_v31 = vadd.f32 1.0, %v1592_v30  ;;  %v32_v30 = vpack.c.bf16 %v24_v28, %v24_v28 }
 0x9b8   :  { %1593 = vrcp.f32 %v429_v31  ;;  %v441_v37 = vand.u32 2147483648, %v429_v31  ;;  %vm435_vm4 = vweird.f32 %v429_v31  ;;  %v439_v38 = vand.u32 2147483647, %v429_v31 }
 0x9ba   :  { %v442_v41 = vor.u32 1.1754944e-38, %v441_v37  ;;  %vm440_vm7 = vcmp.eq.f32.partialorder %v439_v38, 8.507059e+37 }
 0x9be   :  { %v1594_v32 = vpop.eup %1593 }
 0x9bf   :  { %v431_v33 = vmul.f32 %v1594_v32, %v429_v31  ;;  %vm436_vm3 = vweird.f32 %v1594_v32  ;;  %v1853_v31 = vpack.c.bf16 %v25_v29, %v25_v29 }
 0x9c0   :  { %vm437_vm6 = vmor %vm435_vm4, %vm436_vm3 }
 0x9c1   :  { %v432_v34 = vsub.f32 1.0, %v431_v33  ;;  %v91_v33 = vunpack.c.l.b16 %v1853_v31 }
 0x9c3   :  { %v433_v35 = vmul.f32 %v1594_v32, %v432_v34 }
 0x9c5   :  { %v434_v36 = vadd.f32 %v1594_v32, %v433_v35  ;;  %v1861_v35 = vld [vmem:[%s2038_s1 + $0x30] sm:$0xff] }
 0x9c6   :  { %741 = vmatpush.bf16.msrb.mxu1 %v1861_v35  ;;  %799 = vmatpush.bf16.msrb.mxu2 %v1861_v35 }
 0x9c7   :  { %v438_v40 = vsel %vm437_vm6, %v1594_v32, %v434_v36  ;;  %v90_v32 = vunpack.c.l.b16 %v32_v30  ;;  %v1867_v36 = vld [vmem:[%s2038_s1 + $0x28] sm:$0xff]  ;;  %857 = vmatpush.bf16.msrb.mxu0 %v1861_v35 }
 0x9c8   :  { %v443_v43 = vsel %vm440_vm7, %v442_v41, %v438_v40 }
 0x9c9   :  { %v446_v46 = vmul.f32 %v443_v43, %v393_v6  ;;  %v95_v34 = vpack.c.b16 %v91_v33, %v90_v32 }
 0x9ca   :  { %742 = vmatpush.bf16.msrb.mxu1 %v1867_v36  ;;  %800 = vmatpush.bf16.msrb.mxu2 %v1867_v36 }
 0x9cb   :  { %1416 = vmatmul.msk.bf16.gmra.mxu0 %vm102_vm0, %v95_v34 }
 0x9cc   :  { %858 = vmatpush.bf16.msrb.mxu0 %v1867_v36 }
 0x9d0   :  { %1031 = vmatpush.bf16.msra.mxu0 %v1861_v35 }
 0x9d4   :  { %1032 = vmatpush.bf16.msra.mxu0 %v1867_v36 }
 0xa26   :  { %v449_v42 = vpop.permute.xlu1 %448 }
 0xa27   :  { %v451_v45 = vmul.f32 %v449_v42, %v443_v43 }
 0xa29   :  { %453 = vrot.lane.b32.xlu2 %v451_v45, %s1687_s27 }
 0xa48   :  { %v139_v38 = vpop.f32.mrf.mxu0 }
 0xa49   :  { %v140_v40 = vadd.f32 %v139_v38, %v1755_v12 }
 0xa83   :  { %v454_v47 = vpop.permute.xlu2 %453 }
 0xa84   :  { %v456_v48 = vadd.f32 %v454_v47, %v446_v46  ;;  %v1885_v46 = vperm.slane %v1752_v11, 1 }
 0xa86   :  { %1595 = vtanh.f32 %v456_v48 }
 0xa8c   :  { %v1596_v49 = vpop.eup %1595 }
 0xa8d   :  { %459 = vrot.lane.b32.xlu0 %v1596_v49, %s1687_s27 }
 0xaff   :  { %v460_v50 = vpop.permute.xlu0 %459 }
 0xb00   :  { %v1817_v51 = vmul.f32 %v460_v50, %v443_v43 }
 0xb02   :  { %v468_v52 = vpack.c.bf16 %v1817_v51, %v1817_v51 }
 0xb04   :  { %470 = vrot.lane.b32.xlu1 %v468_v52, %s1688_s28 }
 0xb76   :  { %v471_v53 = vpop.permute.xlu1 %470 }
 0xb77   :  { %1434 = vmatmul.msk.bf16.vlgmr.msrb.gmra.mxu3 %vm156_vm5, %v471_v53 }
 0xbfa   :  { %v484_v56 = vpop.f32.mrf.mxu3 }
 0xbfb   :  { %v488_v57 = vadd.f32 %v484_v56, %v137_v55 }
 0xbfd   :  { %1597 = vtanh.f32 %v488_v57  ;;  %v1435_v60 = vmul.f32 -1.442695, %v488_v57 }
 0xbff   :  { %1599 = vpow2.f32 %v1435_v60 }
 0xc02   :  { %v486_v58 = vpop.f32.mrf.mxu3 }
 0xc03   :  { %v1598_v59 = vpop.eup %1597 }
 0xc04   :  { %511 = vrot.lane.b32.xlu2 %v1598_v59, %s1687_s27 }
 0xc05   :  { %v1600_v61 = vpop.eup %1599 }
 0xc06   :  { %v492_v62 = vadd.f32 1.0, %v1600_v61 }
 0xc08   :  { %1601 = vrcp.f32 %v492_v62  ;;  %v504_v4 = vand.u32 2147483648, %v492_v62  ;;  %vm498_vm9 = vweird.f32 %v492_v62  ;;  %v502_v5 = vand.u32 2147483647, %v492_v62 }
 0xc0a   :  { %v505_v7 = vor.u32 1.1754944e-38, %v504_v4  ;;  %vm503_vm11 = vcmp.eq.f32.partialorder %v502_v5, 8.507059e+37 }
 0xc0c   :  { %212 = vrot.lane.b32.xlu2 %v1761_v39, %s1688_s28 }
 0xc0e   :  { %v1602_v63 = vpop.eup %1601 }
 0xc0f   :  { %v494_v0 = vmul.f32 %v1602_v63, %v492_v62  ;;  %vm499_vm8 = vweird.f32 %v1602_v63 }
 0xc10   :  { %vm500_vm10 = vmor %vm498_vm9, %vm499_vm8 }
 0xc11   :  { %v495_v1 = vsub.f32 1.0, %v494_v0 }
 0xc13   :  { %v496_v2 = vmul.f32 %v1602_v63, %v495_v1 }
 0xc15   :  { %v497_v3 = vadd.f32 %v1602_v63, %v496_v2 }
 0xc17   :  { %v501_v6 = vsel %vm500_vm10, %v1602_v63, %v497_v3 }
 0xc18   :  { %v506_v39 = vsel %vm503_vm11, %v505_v7, %v501_v6 }
 0xc19   :  { %v509_v17 = vmul.f32 %v506_v39, %v456_v48 }
 0xc5e   :  { %v512_v8 = vpop.permute.xlu2 %511 }
 0xc5f   :  { %v514_v9 = vmul.f32 %v512_v8, %v506_v39 }
 0xc61   :  { %516 = vrot.lane.b32.xlu0 %v514_v9, %s1687_s27 }
 0xc66   :  { %v213_v13 = vpop.permute.xlu2 %212 }
 0xc67   :  { %215 = vst.msk [vmem:[#allocation2] sm:$0xff] %vm156_vm5, %v213_v13 }
 0xc69   :  { %275 = vrot.lane.b32.xlu0 %v1780_v14, %s1688_s28 }
 0xc6e   :  { %v657_v14 = vld [vmem:[#allocation2] sm:$0xff] }
 0xcd3   :  { %v517_v18 = vpop.permute.xlu0 %516 }
 0xcd4   :  { %v1837_v19 = vadd.f32 %v517_v18, %v509_v17 }
 0xcd6   :  { %1603 = vtanh.f32 %v1837_v19 }
 0xcdb   :  { %v276_v21 = vpop.permute.xlu0 %275 }
 0xcdc   :  { %v1604_v22 = vpop.eup %1603  ;;  %278 = vst.msk [vmem:[#allocation2 + $0x8] sm:$0xff] %vm156_vm5, %v276_v21 }
 0xcdd   :  { %522 = vrot.lane.b32.xlu1 %v1604_v22, %s1687_s27 }
 0xce3   :  { %v658_v23 = vld [vmem:[#allocation2 + $0x8] sm:$0xff] }
 0xce4   :  { %v665_v24 = vpack.c.bf16 %v658_v23, %v657_v14 }
 0xce6   :  { %1448 = vmatmul.msk.bf16.vlgmr.msra.gmra.mxu3 %vm156_vm5, %v665_v24 }
 0xd4f   :  { %v523_v25 = vpop.permute.xlu1 %522 }
 0xd50   :  { %v1843_v26 = vmul.f32 %v523_v25, %v506_v39 }
 0xd52   :  { %v531_v27 = vpack.c.bf16 %v1843_v26, %v1843_v26 }
 0xd54   :  { %533 = vrot.lane.b32.xlu1 %v531_v27, %s1688_s28 }
 0xd69   :  { %v703_v47 = vpop.f32.mrf.mxu3 }
 0xdc6   :  { %v534_v37 = vpop.permute.xlu1 %533 }
 0xdc7   :  { %1436 = vmatmul.msk.bf16.vlgmr.msra.gmra.mxu1 %vm156_vm5, %v534_v37 }
 0xdc8   :  { %915 = vmatpush.bf16.msra.mxu1 %v1861_v35 }
 0xdcc   :  { %916 = vmatpush.bf16.msra.mxu1 %v1867_v36 }
 0xdd7   :  { %743 = vmatmul.bf16.vlgmr.msrb.gmra.mxu1 %v1686_v10  ;;  %v704_v10 = vadd.f32 %v703_v47, %v1885_v46 }
 0xdd8   :  { %1089 = vmatpush.bf16.msrb.mxu1 %v1861_v35 }
 0xddc   :  { %1090 = vmatpush.bf16.msrb.mxu1 %v1867_v36 }
 0xe44   :  { %v547_v41 = vpop.f32.mrf.mxu1 }
 0xe45   :  { %v551_v42 = vadd.f32 %v547_v41, %v140_v40 }
 0xe47   :  { %1605 = vtanh.f32 %v551_v42  ;;  %v1437_v53 = vmul.f32 -1.442695, %v551_v42 }
 0xe4c   :  { %v549_v43 = vpop.f32.mrf.mxu1 }
 0xe4d   :  { %v1606_v45 = vpop.eup %1605 }
 0xe4e   :  { %574 = vrot.lane.b32.xlu2 %v1606_v45, %s1687_s27  ;;  %v705_v45 = vpop.f32.mrf.mxu3 }
 0xe4f   :  { %v706_v47 = vadd.f32 %v705_v45, %v1885_v46 }
 0xe54   :  { %v744_v48 = vpop.f32.mrf.mxu1 }
 0xe55   :  { %v748_v49 = vadd.f32 %v744_v48, %v704_v10 }
 0xe57   :  { %1607 = vtanh.f32 %v748_v49  ;;  %v1460_v61 = vmul.f32 -1.442695, %v748_v49 }
 0xe58   :  { %1609 = vpow2.f32 %v1437_v53 }
 0xe5c   :  { %v746_v50 = vpop.f32.mrf.mxu1 }
 0xe5d   :  { %v1608_v52 = vpop.eup %1607 }
 0xe5e   :  { %771 = vrot.lane.b32.xlu0 %v1608_v52, %s1687_s27  ;;  %v1610_v54 = vpop.eup %1609 }
 0xe5f   :  { %v555_v55 = vadd.f32 1.0, %v1610_v54 }
 0xe61   :  { %1611 = vrcp.f32 %v555_v55  ;;  %v567_v60 = vand.u32 2147483648, %v555_v55  ;;  %vm561_vm13 = vweird.f32 %v555_v55  ;;  %v565_v62 = vand.u32 2147483647, %v555_v55 }
 0xe62   :  { %1613 = vpow2.f32 %v1460_v61 }
 0xe63   :  { %v568_v0 = vor.u32 1.1754944e-38, %v567_v60  ;;  %vm566_vm15 = vcmp.eq.f32.partialorder %v565_v62, 8.507059e+37 }
 0xe67   :  { %v1612_v56 = vpop.eup %1611 }
 0xe68   :  { %v557_v57 = vmul.f32 %v1612_v56, %v555_v55  ;;  %vm562_vm12 = vweird.f32 %v1612_v56  ;;  %v1614_v4 = vpop.eup %1613 }
 0xe69   :  { %vm563_vm14 = vmor %vm561_vm13, %vm562_vm12  ;;  %v752_v5 = vadd.f32 1.0, %v1614_v4 }
 0xe6a   :  { %v558_v58 = vsub.f32 1.0, %v557_v57 }
 0xe6b   :  { %1615 = vrcp.f32 %v752_v5  ;;  %v764_v13 = vand.u32 2147483648, %v752_v5  ;;  %vm758_vm2 = vweird.f32 %v752_v5  ;;  %v762_v15 = vand.u32 2147483647, %v752_v5 }
 0xe6c   :  { %v559_v11 = vmul.f32 %v1612_v56, %v558_v58 }
 0xe6d   :  { %v765_v17 = vor.u32 1.1754944e-38, %v764_v13  ;;  %vm763_vm4 = vcmp.eq.f32.partialorder %v762_v15, 8.507059e+37  ;;  %v1924_v13 = vpop.f32.mrf.mxu0 }
 0xe6e   :  { %v560_v59 = vadd.f32 %v1612_v56, %v559_v11 }
 0xe70   :  { %v564_v63 = vsel %vm563_vm14, %v1612_v56, %v560_v59 }
 0xe71   :  { %v569_v2 = vsel %vm566_vm15, %v568_v0, %v564_v63  ;;  %v1616_v6 = vpop.eup %1615 }
 0xe72   :  { %v754_v7 = vmul.f32 %v1616_v6, %v752_v5  ;;  %vm759_vm1 = vweird.f32 %v1616_v6  ;;  %v572_v14 = vmul.f32 %v569_v2, %v1837_v19 }
 0xe73   :  { %vm760_vm3 = vmor %vm758_vm2, %vm759_vm1 }
 0xe74   :  { %v755_v8 = vsub.f32 1.0, %v754_v7 }
 0xe76   :  { %v756_v39 = vmul.f32 %v1616_v6, %v755_v8 }
 0xe78   :  { %v757_v9 = vadd.f32 %v1616_v6, %v756_v39 }
 0xe7a   :  { %v761_v16 = vsel %vm760_vm3, %v1616_v6, %v757_v9 }
 0xe7b   :  { %v766_v21 = vsel %vm763_vm4, %v765_v17, %v761_v16 }
 0xe7c   :  { %v769_v27 = vmul.f32 0.0, %v766_v21 }
 0xea8   :  { %v575_v1 = vpop.permute.xlu2 %574 }
 0xea9   :  { %v577_v3 = vmul.f32 %v575_v1, %v569_v2 }
 0xeab   :  { %579 = vrot.lane.b32.xlu1 %v577_v3, %s1687_s27 }
 0xed0   :  { %v772_v18 = vpop.permute.xlu0 %771 }
 0xed1   :  { %v774_v22 = vmul.f32 %v772_v18, %v766_v21 }
 0xed3   :  { %776 = vrot.lane.b32.xlu2 %v774_v22, %s1687_s27 }
 0xf1d   :  { %v580_v23 = vpop.permute.xlu1 %579 }
 0xf1e   :  { %v1892_v24 = vadd.f32 %v580_v23, %v572_v14 }
 0xf20   :  { %1617 = vtanh.f32 %v1892_v24 }
 0xf26   :  { %v1618_v25 = vpop.eup %1617 }
 0xf27   :  { %585 = vrot.lane.b32.xlu0 %v1618_v25, %s1687_s27 }
 0xf2d   :  { %v777_v28 = vpop.permute.xlu2 %776 }
 0xf2e   :  { %v779_v29 = vadd.f32 %v777_v28, %v769_v27 }
 0xf30   :  { %1619 = vtanh.f32 %v779_v29 }
 0xf36   :  { %v1620_v30 = vpop.eup %1619 }
 0xf37   :  { %782 = vrot.lane.b32.xlu1 %v1620_v30, %s1687_s27 }
 0xf99   :  { %v586_v32 = vpop.permute.xlu0 %585 }
 0xf9a   :  { %v1897_v33 = vmul.f32 %v586_v32, %v569_v2 }
 0xf9c   :  { %v594_v19 = vpack.c.bf16 %v1897_v33, %v1897_v33 }
 0xf9e   :  { %596 = vrot.lane.b32.xlu2 %v594_v19, %s1688_s28 }
 0xfa9   :  { %v783_v34 = vpop.permute.xlu1 %782 }
 0xfaa   :  { %v785_v37 = vmul.f32 %v783_v34, %v766_v21 }
 0xfac   :  { %v786_v38 = vpack.c.bf16 %v785_v37, %v785_v37 }
 0xfae   :  { %788 = vrot.lane.b32.xlu0 %v786_v38, %s1688_s28 }
 0xff8   :  { %v597_v40 = vpop.permute.xlu2 %596 }
 0xff9   :  { %1438 = vmatmul.msk.bf16.vlgmr.msra.gmra.mxu2 %vm156_vm5, %v597_v40 }
 0xffa   :  { %973 = vmatpush.bf16.msra.mxu2 %v1861_v35 }
 0xffe   :  { %974 = vmatpush.bf16.msra.mxu2 %v1867_v36 }
0x1020   :  { %v789_v41 = vpop.permute.xlu0 %788 }
0x1021   :  { %1461 = vmatmul.msk.bf16.vlgmr.msrb.gmra.mxu2 %vm156_vm5, %v789_v41 }
0x1022   :  { %1147 = vmatpush.bf16.msrb.mxu2 %v1861_v35 }
0x1026   :  { %1148 = vmatpush.bf16.msrb.mxu2 %v1867_v36 }
0x107c   :  { %v1909_v42 = vpop.f32.mrf.mxu2 }
0x1084   :  { %v612_v43 = vpop.f32.mrf.mxu2 }
0x10a4   :  { %v802_v10 = vpop.f32.mrf.mxu2 }
0x10a5   :  { %v806_v48 = vadd.f32 %v802_v10, %v706_v47 }
0x10a7   :  { %1621 = vtanh.f32 %v806_v48  ;;  %v1462_v52 = vmul.f32 -1.442695, %v806_v48 }
0x10a9   :  { %1623 = vpow2.f32 %v1462_v52 }
0x10ac   :  { %v804_v49 = vpop.f32.mrf.mxu2 }
0x10ad   :  { %v1622_v50 = vpop.eup %1621 }
0x10ae   :  { %829 = vrot.lane.b32.xlu1 %v1622_v50, %s1687_s27 }
0x10af   :  { %v1624_v35 = vpop.eup %1623 }
0x10b0   :  { %v810_v36 = vadd.f32 1.0, %v1624_v35 }
0x10b2   :  { %1625 = vrcp.f32 %v810_v36  ;;  %v822_v58 = vand.u32 2147483648, %v810_v36  ;;  %vm816_vm7 = vweird.f32 %v810_v36  ;;  %v820_v11 = vand.u32 2147483647, %v810_v36 }
0x10b4   :  { %v823_v60 = vor.u32 1.1754944e-38, %v822_v58  ;;  %vm821_vm9 = vcmp.eq.f32.partialorder %v820_v11, 8.507059e+37 }
0x10b6   :  { %338 = vrot.lane.b32.xlu1 %v1790_v44, %s1688_s28 }
0x10b8   :  { %v1626_v53 = vpop.eup %1625 }
0x10b9   :  { %v812_v54 = vmul.f32 %v1626_v53, %v810_v36  ;;  %vm817_vm6 = vweird.f32 %v1626_v53 }
0x10ba   :  { %vm818_vm8 = vmor %vm816_vm7, %vm817_vm6 }
0x10bb   :  { %v813_v55 = vsub.f32 1.0, %v812_v54 }
0x10bd   :  { %v814_v56 = vmul.f32 %v1626_v53, %v813_v55 }
0x10bf   :  { %v815_v57 = vadd.f32 %v1626_v53, %v814_v56 }
0x10c1   :  { %v819_v59 = vsel %vm818_vm8, %v1626_v53, %v815_v57 }
0x10c2   :  { %v824_v44 = vsel %vm821_vm9, %v823_v60, %v819_v59 }
0x10c3   :  { %v827_v0 = vmul.f32 %v824_v44, %v779_v29 }
0x1120   :  { %v830_v61 = vpop.permute.xlu1 %829 }
0x1121   :  { %v832_v62 = vmul.f32 %v830_v61, %v824_v44 }
0x1123   :  { %834 = vrot.lane.b32.xlu2 %v832_v62, %s1687_s27 }
0x1128   :  { %v339_v63 = vpop.permute.xlu1 %338 }
0x1129   :  { %341 = vst.msk [vmem:[#allocation2 + $0x10] sm:$0xff] %vm156_vm5, %v339_v63 }
0x112b   :  { %401 = vrot.lane.b32.xlu2 %v1807_v20, %s1688_s28 }
0x1130   :  { %v659_v5 = vld [vmem:[#allocation2 + $0x10] sm:$0xff] }
0x117d   :  { %v835_v1 = vpop.permute.xlu2 %834 }
0x117e   :  { %v837_v2 = vadd.f32 %v835_v1, %v827_v0 }
0x1180   :  { %1627 = vtanh.f32 %v837_v2 }
0x1185   :  { %v402_v3 = vpop.permute.xlu2 %401 }
0x1186   :  { %v1628_v4 = vpop.eup %1627  ;;  %404 = vst.msk [vmem:[#allocation2 + $0x18] sm:$0xff] %vm156_vm5, %v402_v3 }
0x1187   :  { %840 = vrot.lane.b32.xlu0 %v1628_v4, %s1687_s27 }
0x118d   :  { %v660_v6 = vld [vmem:[#allocation2 + $0x18] sm:$0xff] }
0x118e   :  { %v666_v7 = vpack.c.bf16 %v660_v6, %v659_v5 }
0x1190   :  { %1449 = vmatmul.msk.bf16.gmra.mxu3 %vm156_vm5, %v666_v7 }
0x11f9   :  { %v841_v8 = vpop.permute.xlu0 %840 }
0x11fa   :  { %v843_v39 = vmul.f32 %v841_v8, %v824_v44 }
0x11fc   :  { %v844_v9 = vpack.c.bf16 %v843_v39, %v843_v39 }
0x11fe   :  { %846 = vrot.lane.b32.xlu0 %v844_v9, %s1688_s28 }
0x1213   :  { %v708_v15 = vpop.f32.mrf.mxu3 }
0x1214   :  { %v709_v16 = vadd.f32 %v708_v15, %v1885_v46 }
0x121b   :  { %v710_v36 = vpop.f32.mrf.mxu3 }
0x121c   :  { %v711_v53 = vadd.f32 %v710_v36, %v1885_v46 }
0x1270   :  { %v847_v20 = vpop.permute.xlu0 %846 }
0x1271   :  { %1463 = vmatmul.msk.bf16.vlgmr.msrb.gmra.mxu0 %vm156_vm5, %v847_v20 }
0x12ee   :  { %v860_v17 = vpop.f32.mrf.mxu0 }
0x12ef   :  { %v864_v18 = vadd.f32 %v860_v17, %v709_v16 }
0x12f1   :  { %1629 = vtanh.f32 %v864_v18  ;;  %v1464_v14 = vmul.f32 -1.442695, %v864_v18 }
0x12f3   :  { %1631 = vpow2.f32 %v1464_v14 }
0x12f6   :  { %v862_v21 = vpop.f32.mrf.mxu0 }
0x12f7   :  { %v1630_v22 = vpop.eup %1629 }
0x12f8   :  { %887 = vrot.lane.b32.xlu1 %v1630_v22, %s1687_s27 }
0x12f9   :  { %v1632_v23 = vpop.eup %1631 }
0x12fa   :  { %v868_v25 = vadd.f32 1.0, %v1632_v23 }
0x12fc   :  { %1633 = vrcp.f32 %v868_v25  ;;  %v880_v19 = vand.u32 2147483648, %v868_v25  ;;  %vm874_vm11 = vweird.f32 %v868_v25  ;;  %v878_v34 = vand.u32 2147483647, %v868_v25 }
0x12fe   :  { %v881_v38 = vor.u32 1.1754944e-38, %v880_v19  ;;  %vm879_vm13 = vcmp.eq.f32.partialorder %v878_v34, 8.507059e+37 }
0x1302   :  { %v1634_v27 = vpop.eup %1633 }
0x1303   :  { %v870_v28 = vmul.f32 %v1634_v27, %v868_v25  ;;  %vm875_vm10 = vweird.f32 %v1634_v27 }
0x1304   :  { %vm876_vm12 = vmor %vm874_vm11, %vm875_vm10 }
0x1305   :  { %v871_v29 = vsub.f32 1.0, %v870_v28 }
0x1307   :  { %v872_v30 = vmul.f32 %v1634_v27, %v871_v29 }
0x1309   :  { %v873_v32 = vadd.f32 %v1634_v27, %v872_v30 }
0x130b   :  { %v877_v37 = vsel %vm876_vm12, %v1634_v27, %v873_v32 }
0x130c   :  { %v882_v41 = vsel %vm879_vm13, %v881_v38, %v877_v37 }
0x130d   :  { %v885_v45 = vmul.f32 %v882_v41, %v837_v2 }
0x136a   :  { %v888_v40 = vpop.permute.xlu1 %887 }
0x136b   :  { %v890_v43 = vmul.f32 %v888_v40, %v882_v41 }
0x136d   :  { %892 = vrot.lane.b32.xlu2 %v890_v43, %s1687_s27 }
0x13c7   :  { %v893_v47 = vpop.permute.xlu2 %892 }
0x13c8   :  { %v895_v10 = vadd.f32 %v893_v47, %v885_v45 }
0x13ca   :  { %1635 = vtanh.f32 %v895_v10 }
0x13d0   :  { %v1636_v48 = vpop.eup %1635 }
0x13d1   :  { %898 = vrot.lane.b32.xlu0 %v1636_v48, %s1687_s27 }
0x1443   :  { %v899_v49 = vpop.permute.xlu0 %898 }
0x1444   :  { %v901_v50 = vmul.f32 %v899_v49, %v882_v41 }
0x1446   :  { %v902_v52 = vpack.c.bf16 %v901_v50, %v901_v50 }
0x1448   :  { %904 = vrot.lane.b32.xlu1 %v902_v52, %s1688_s28 }
0x14ba   :  { %v905_v35 = vpop.permute.xlu1 %904 }
0x14bb   :  { %1465 = vmatmul.msk.bf16.vlgmr.msra.gmra.mxu1 %vm156_vm5, %v905_v35 }
0x1538   :  { %v918_v54 = vpop.f32.mrf.mxu1 }
0x1539   :  { %v922_v55 = vadd.f32 %v918_v54, %v711_v53 }
0x153b   :  { %1637 = vtanh.f32 %v922_v55  ;;  %v1466_v58 = vmul.f32 -1.442695, %v922_v55 }
0x153d   :  { %1639 = vpow2.f32 %v1466_v58 }
0x1540   :  { %v920_v56 = vpop.f32.mrf.mxu1 }
0x1541   :  { %v1638_v57 = vpop.eup %1637 }
0x1542   :  { %945 = vrot.lane.b32.xlu2 %v1638_v57, %s1687_s27 }
0x1543   :  { %v1640_v11 = vpop.eup %1639 }
0x1544   :  { %v926_v59 = vadd.f32 1.0, %v1640_v11 }
0x1546   :  { %1641 = vrcp.f32 %v926_v59  ;;  %v938_v0 = vand.u32 2147483648, %v926_v59  ;;  %vm932_vm15 = vweird.f32 %v926_v59  ;;  %v936_v1 = vand.u32 2147483647, %v926_v59 }
0x1548   :  { %v939_v3 = vor.u32 1.1754944e-38, %v938_v0  ;;  %vm937_vm2 = vcmp.eq.f32.partialorder %v936_v1, 8.507059e+37 }
0x154a   :  { %464 = vrot.lane.b32.xlu2 %v1817_v51, %s1688_s28 }
0x154c   :  { %v1642_v60 = vpop.eup %1641 }
0x154d   :  { %v928_v61 = vmul.f32 %v1642_v60, %v926_v59  ;;  %vm933_vm14 = vweird.f32 %v1642_v60 }
0x154e   :  { %vm934_vm1 = vmor %vm932_vm15, %vm933_vm14 }
0x154f   :  { %v929_v44 = vsub.f32 1.0, %v928_v61 }
0x1551   :  { %v930_v62 = vmul.f32 %v1642_v60, %v929_v44 }
0x1553   :  { %v931_v63 = vadd.f32 %v1642_v60, %v930_v62 }
0x1555   :  { %v935_v2 = vsel %vm934_vm1, %v1642_v60, %v931_v63 }
0x1556   :  { %v940_v51 = vsel %vm937_vm2, %v939_v3, %v935_v2 }
0x1557   :  { %v943_v7 = vmul.f32 %v940_v51, %v895_v10  ;;  %v142_v10 = vadd.f32 %v1924_v13, %v1755_v12 }
0x1559   :  { %v614_v49 = vadd.f32 %v1909_v42, %v142_v10 }
0x155b   :  { %v1439_v13 = vmul.f32 -1.442695, %v614_v49 }
0x159c   :  { %v946_v4 = vpop.permute.xlu2 %945 }
0x159d   :  { %v948_v5 = vmul.f32 %v946_v4, %v940_v51 }
0x159f   :  { %950 = vrot.lane.b32.xlu0 %v948_v5, %s1687_s27 }
0x15a4   :  { %v465_v6 = vpop.permute.xlu2 %464 }
0x15a5   :  { %467 = vst.msk [vmem:[#allocation2 + $0x20] sm:$0xff] %vm156_vm5, %v465_v6 }
0x15a7   :  { %527 = vrot.lane.b32.xlu0 %v1843_v26, %s1688_s28 }
0x15ac   :  { %v661_v15 = vld [vmem:[#allocation2 + $0x20] sm:$0xff] }
0x1611   :  { %v951_v8 = vpop.permute.xlu0 %950 }
0x1612   :  { %v953_v39 = vadd.f32 %v951_v8, %v943_v7 }
0x1614   :  { %1643 = vtanh.f32 %v953_v39 }
0x1619   :  { %v528_v9 = vpop.permute.xlu0 %527 }
0x161a   :  { %v1644_v20 = vpop.eup %1643  ;;  %530 = vst.msk [vmem:[#allocation2 + $0x28] sm:$0xff] %vm156_vm5, %v528_v9 }
0x161b   :  { %956 = vrot.lane.b32.xlu1 %v1644_v20, %s1687_s27 }
0x1621   :  { %v662_v16 = vld [vmem:[#allocation2 + $0x28] sm:$0xff] }
0x1622   :  { %v667_v17 = vpack.c.bf16 %v662_v16, %v661_v15 }
0x1624   :  { %1450 = vmatmul.msk.bf16.gmra.mxu3 %vm156_vm5, %v667_v17 }
0x168d   :  { %v957_v18 = vpop.permute.xlu1 %956 }
0x168e   :  { %v959_v21 = vmul.f32 %v957_v18, %v940_v51 }
0x1690   :  { %v960_v22 = vpack.c.bf16 %v959_v21, %v959_v21 }
0x1692   :  { %962 = vrot.lane.b32.xlu1 %v960_v22, %s1688_s28 }
0x16a7   :  { %v713_v14 = vpop.f32.mrf.mxu3 }
0x16a8   :  { %v714_v23 = vadd.f32 %v713_v14, %v1885_v46 }
0x16af   :  { %v715_v6 = vpop.f32.mrf.mxu3 }
0x16b0   :  { %v716_v7 = vadd.f32 %v715_v6, %v1885_v46 }
0x1704   :  { %v963_v26 = vpop.permute.xlu1 %962 }
0x1705   :  { %1467 = vmatmul.msk.bf16.vlgmr.msra.gmra.mxu2 %vm156_vm5, %v963_v26 }
0x1788   :  { %v976_v25 = vpop.f32.mrf.mxu2 }
0x1789   :  { %v980_v27 = vadd.f32 %v976_v25, %v714_v23 }
0x178b   :  { %1645 = vtanh.f32 %v980_v27  ;;  %v1468_v30 = vmul.f32 -1.442695, %v980_v27 }
0x178d   :  { %1647 = vpow2.f32 %v1468_v30 }
0x1790   :  { %v978_v28 = vpop.f32.mrf.mxu2 }
0x1791   :  { %v1646_v29 = vpop.eup %1645 }
0x1792   :  { %1003 = vrot.lane.b32.xlu2 %v1646_v29, %s1687_s27 }
0x1793   :  { %v1648_v32 = vpop.eup %1647 }
0x1794   :  { %v984_v19 = vadd.f32 1.0, %v1648_v32 }
0x1796   :  { %1649 = vrcp.f32 %v984_v19  ;;  %v996_v43 = vand.u32 2147483648, %v984_v19  ;;  %vm990_vm4 = vweird.f32 %v984_v19  ;;  %v994_v45 = vand.u32 2147483647, %v984_v19 }
0x1797   :  { %1651 = vtanh.f32 %v614_v49 }
0x1798   :  { %v997_v48 = vor.u32 1.1754944e-38, %v996_v43  ;;  %vm995_vm7 = vcmp.eq.f32.partialorder %v994_v45, 8.507059e+37 }
0x179c   :  { %v1650_v34 = vpop.eup %1649 }
0x179d   :  { %v986_v37 = vmul.f32 %v1650_v34, %v984_v19  ;;  %vm991_vm3 = vweird.f32 %v1650_v34  ;;  %v1652_v36 = vpop.eup %1651 }
0x179e   :  { %vm992_vm6 = vmor %vm990_vm4, %vm991_vm3 }
0x179f   :  { %v987_v38 = vsub.f32 1.0, %v986_v37 }
0x17a1   :  { %v988_v40 = vmul.f32 %v1650_v34, %v987_v38 }
0x17a3   :  { %v989_v41 = vadd.f32 %v1650_v34, %v988_v40 }
0x17a5   :  { %v993_v47 = vsel %vm992_vm6, %v1650_v34, %v989_v41 }
0x17a6   :  { %v998_v52 = vsel %vm995_vm7, %v997_v48, %v993_v47 }
0x17a7   :  { %v1001_v53 = vmul.f32 %v998_v52, %v953_v39 }
0x17ec   :  { %v1004_v50 = vpop.permute.xlu2 %1003 }
0x17ed   :  { %v1006_v35 = vmul.f32 %v1004_v50, %v998_v52 }
0x17ef   :  { %1008 = vrot.lane.b32.xlu0 %v1006_v35, %s1687_s27 }
0x17f7   :  { %637 = vrot.lane.b32.xlu0 %v1652_v36, %s1687_s27 }
0x1861   :  { %v1009_v54 = vpop.permute.xlu0 %1008 }
0x1862   :  { %v1952_v55 = vadd.f32 %v1009_v54, %v1001_v53 }
0x1864   :  { %1653 = vtanh.f32 %v1952_v55 }
0x1865   :  { %1655 = vpow2.f32 %v1439_v13 }
0x1869   :  { %v638_v3 = vpop.permute.xlu0 %637 }
0x186a   :  { %v1654_v12 = vpop.eup %1653 }
0x186b   :  { %1014 = vrot.lane.b32.xlu1 %v1654_v12, %s1687_s27  ;;  %v1656_v42 = vpop.eup %1655 }
0x186c   :  { %v618_v56 = vadd.f32 1.0, %v1656_v42 }
0x186e   :  { %1657 = vrcp.f32 %v618_v56  ;;  %v630_v63 = vand.u32 2147483648, %v618_v56  ;;  %vm624_vm9 = vweird.f32 %v618_v56  ;;  %v628_v0 = vand.u32 2147483647, %v618_v56 }
0x1870   :  { %v631_v2 = vor.u32 1.1754944e-38, %v630_v63  ;;  %vm629_vm11 = vcmp.eq.f32.partialorder %v628_v0, 8.507059e+37 }
0x1874   :  { %v1658_v57 = vpop.eup %1657 }
0x1875   :  { %v620_v58 = vmul.f32 %v1658_v57, %v618_v56  ;;  %vm625_vm8 = vweird.f32 %v1658_v57 }
0x1876   :  { %vm626_vm10 = vmor %vm624_vm9, %vm625_vm8 }
0x1877   :  { %v621_v11 = vsub.f32 1.0, %v620_v58 }
0x1879   :  { %v622_v59 = vmul.f32 %v1658_v57, %v621_v11 }
0x187b   :  { %v623_v44 = vadd.f32 %v1658_v57, %v622_v59 }
0x187d   :  { %v627_v1 = vsel %vm626_vm10, %v1658_v57, %v623_v44 }
0x187e   :  { %v632_v4 = vsel %vm629_vm11, %v631_v2, %v627_v1 }
0x187f   :  { %v640_v51 = vmul.f32 %v638_v3, %v632_v4  ;;  %v635_v20 = vmul.f32 %v632_v4, %v1892_v24 }
0x18dd   :  { %v1015_v60 = vpop.permute.xlu1 %1014 }
0x18de   :  { %v1017_v61 = vmul.f32 %v1015_v60, %v998_v52 }
0x18e0   :  { %v1018_v62 = vpack.c.bf16 %v1017_v61, %v1017_v61 }
0x18e2   :  { %1020 = vrot.lane.b32.xlu2 %v1018_v62, %s1688_s28 }
0x18ea   :  { %642 = vrot.lane.b32.xlu2 %v640_v51, %s1687_s27 }
0x193c   :  { %v1021_v5 = vpop.permute.xlu2 %1020 }
0x193d   :  { %1469 = vmatmul.msk.bf16.vlgmr.msra.gmra.mxu0 %vm156_vm5, %v1021_v5 }
0x1944   :  { %v643_v9 = vpop.permute.xlu2 %642 }
0x1945   :  { %v645_v15 = vadd.f32 %v643_v9, %v635_v20 }
0x19ba   :  { %v1034_v8 = vpop.f32.mrf.mxu0 }
0x19bb   :  { %v1038_v39 = vadd.f32 %v1034_v8, %v716_v7 }
0x19bd   :  { %1659 = vtanh.f32 %v1038_v39  ;;  %v1470_v21 = vmul.f32 -1.442695, %v1038_v39 }
0x19be   :  { %1661 = vtanh.f32 %v645_v15 }
0x19bf   :  { %1663 = vpow2.f32 %v1470_v21 }
0x19c2   :  { %v1036_v16 = vpop.f32.mrf.mxu0 }
0x19c3   :  { %v1660_v17 = vpop.eup %1659 }
0x19c4   :  { %1061 = vrot.lane.b32.xlu1 %v1660_v17, %s1687_s27  ;;  %v1662_v18 = vpop.eup %1661 }
0x19c5   :  { %v1664_v22 = vpop.eup %1663 }
0x19c6   :  { %v1042_v26 = vadd.f32 1.0, %v1664_v22 }
0x19c8   :  { %1665 = vrcp.f32 %v1042_v26  ;;  %v1054_v24 = vand.u32 2147483648, %v1042_v26  ;;  %vm1048_vm13 = vweird.f32 %v1042_v26  ;;  %v1052_v29 = vand.u32 2147483647, %v1042_v26 }
0x19ca   :  { %v1055_v32 = vor.u32 1.1754944e-38, %v1054_v24  ;;  %vm1053_vm15 = vcmp.eq.f32.partialorder %v1052_v29, 8.507059e+37 }
0x19cc   :  { %648 = vrot.lane.b32.xlu1 %v1662_v18, %s1687_s27 }
0x19ce   :  { %v1666_v14 = vpop.eup %1665 }
0x19cf   :  { %v1044_v23 = vmul.f32 %v1666_v14, %v1042_v26  ;;  %vm1049_vm12 = vweird.f32 %v1666_v14 }
0x19d0   :  { %vm1050_vm14 = vmor %vm1048_vm13, %vm1049_vm12 }
0x19d1   :  { %v1045_v25 = vsub.f32 1.0, %v1044_v23 }
0x19d3   :  { %v1046_v27 = vmul.f32 %v1666_v14, %v1045_v25 }
0x19d5   :  { %v1047_v28 = vadd.f32 %v1666_v14, %v1046_v27 }
0x19d7   :  { %v1051_v30 = vsel %vm1050_vm14, %v1666_v14, %v1047_v28 }
0x19d8   :  { %v1056_v34 = vsel %vm1053_vm15, %v1055_v32, %v1051_v30 }
0x19d9   :  { %v1059_v41 = vmul.f32 %v1056_v34, %v1952_v55 }
0x1a36   :  { %v1062_v19 = vpop.permute.xlu1 %1061 }
0x1a37   :  { %v1064_v37 = vmul.f32 %v1062_v19, %v1056_v34 }
0x1a39   :  { %1066 = vrot.lane.b32.xlu0 %v1064_v37, %s1687_s27 }
0x1a3e   :  { %v649_v38 = vpop.permute.xlu1 %648 }
0x1a3f   :  { %v651_v40 = vmul.f32 %v649_v38, %v632_v4 }
0x1a41   :  { %590 = vrot.lane.b32.xlu0 %v1897_v33, %s1688_s28  ;;  %653 = vrot.lane.b32.xlu1 %v651_v40, %s1688_s28 }
0x1aab   :  { %v1067_v43 = vpop.permute.xlu0 %1066 }
0x1aac   :  { %v1069_v45 = vadd.f32 %v1067_v43, %v1059_v41 }
0x1aae   :  { %1667 = vtanh.f32 %v1069_v45 }
0x1ab3   :  { %v591_v47 = vpop.permute.xlu0 %590  ;;  %v654_v10 = vpop.permute.xlu1 %653 }
0x1ab4   :  { %v1668_v48 = vpop.eup %1667  ;;  %593 = vst.msk [vmem:[#allocation2 + $0x30] sm:$0xff] %vm156_vm5, %v591_v47 }
0x1ab5   :  { %656 = vst.msk [vmem:[#allocation2 + $0x38] sm:$0xff] %vm156_vm5, %v654_v10  ;;  %1072 = vrot.lane.b32.xlu2 %v1668_v48, %s1687_s27  ;;  %v1543_v10 = vld [vmem:[%s2041_s2 + $0x10] sm:$0xff]  ;;  %v1542_v48 = vld [vmem:[%s2041_s2 + $0x8] sm:$0xff] }
0x1ab6   :  { %1209 = vmatpush.bf16.msrb.mxu0 %v1543_v10  ;;  %1239 = vmatpush.bf16.msra.mxu1 %v1542_v48 }
0x1ab9   :  { %1479 = vmatmul.msk.bf16.vlgmr.msrb.gmra.mxu0 %vm102_vm0, %v1853_v31  ;;  %v1544_v31 = vld [vmem:[%s2041_s2 + $0x18] sm:$0xff]  ;;  %vm1403_vm0 = vcmask 31744  }
0x1abb   :  { %v663_v49 = vld [vmem:[#allocation2 + $0x30] sm:$0xff] }
0x1abc   :  { %v664_v50 = vld [vmem:[#allocation2 + $0x38] sm:$0xff] }
0x1abd   :  { %v668_v52 = vpack.c.bf16 %v664_v50, %v663_v49  ;;  %v1541_v49 = vld [vmem:[%s2041_s2] sm:$0xff] }
0x1abe   :  { %1240 = vmatpush.bf16.msra.mxu1 %v1541_v49 }
0x1abf   :  { %1451 = vmatmul.msk.bf16.gmra.mxu3 %vm156_vm5, %v668_v52 }
0x1b0f   :  { %v1073_v33 = vpop.permute.xlu2 %1072 }
0x1b10   :  { %v1075_v35 = vmul.f32 %v1073_v33, %v1056_v34 }
0x1b12   :  { %v1076_v36 = vpack.c.bf16 %v1075_v35, %v1075_v35  ;;  %v1545_v35 = vld [vmem:[%s2041_s2 + $0x20] sm:$0xff] }
0x1b13   :  { %1272 = vmatpush.bf16.msra.mxu2 %v1545_v35 }
0x1b14   :  { %1078 = vrot.lane.b32.xlu2 %v1076_v36, %s1688_s28 }
0x1b17   :  { %1273 = vmatpush.bf16.msra.mxu2 %v1544_v31 }
0x1b36   :  { %v1211_v36 = vpop.f32.mrf.mxu0 }
0x1b42   :  { %v718_v54 = vpop.f32.mrf.mxu3 }
0x1b43   :  { %v719_v55 = vadd.f32 %v718_v54, %v1885_v46 }
0x1b4a   :  { %v720_v16 = vpop.f32.mrf.mxu3 }
0x1b4b   :  { %v721_v17 = vadd.f32 %v720_v16, %v1885_v46 }
0x1b6e   :  { %v1079_v53 = vpop.permute.xlu2 %1078 }
0x1b6f   :  { %1471 = vmatmul.msk.bf16.vlgmr.msrb.gmra.mxu1 %vm156_vm5, %v1079_v53  ;;  %v1213_v53 = vpop.f32.mrf.mxu0 }
0x1bec   :  { %v1092_v12 = vpop.f32.mrf.mxu1 }
0x1bed   :  { %v1096_v13 = vadd.f32 %v1092_v12, %v719_v55  ;;  %v1547_v55 = vld [vmem:[%s2041_s2 + $0x30] sm:$0xff]  ;;  %v1546_v12 = vld [vmem:[%s2041_s2 + $0x28] sm:$0xff] }
0x1bee   :  { %1303 = vmatpush.bf16.msrb.mxu3 %v1547_v55 }
0x1bef   :  { %1669 = vtanh.f32 %v1096_v13  ;;  %v1472_v57 = vmul.f32 -1.442695, %v1096_v13  ;;  %v1685_v13 = vld [vmem:[%s2040_s3] sm:$0xff] }
0x1bf0   :  { %v1312_v16 = vperm.slane %v1685_v13, 5 }
0x1bf1   :  { %1671 = vpow2.f32 %v1472_v57 }
0x1bf2   :  { %1304 = vmatpush.bf16.msrb.mxu3 %v1546_v12 }
0x1bf4   :  { %v1094_v42 = vpop.f32.mrf.mxu1 }
0x1bf5   :  { %v1670_v56 = vpop.eup %1669  ;;  %v1246_v42 = vperm.slane %v1685_v13, 2 }
0x1bf6   :  { %1119 = vrot.lane.b32.xlu0 %v1670_v56, %s1687_s27 }
0x1bf7   :  { %v1672_v58 = vpop.eup %1671 }
0x1bf8   :  { %v1100_v11 = vadd.f32 1.0, %v1672_v58 }
0x1bfa   :  { %1673 = vrcp.f32 %v1100_v11  ;;  %v1112_v63 = vand.u32 2147483648, %v1100_v11  ;;  %vm1106_vm2 = vweird.f32 %v1100_v11  ;;  %v1110_v0 = vand.u32 2147483647, %v1100_v11 }
0x1bfc   :  { %v1113_v2 = vor.u32 1.1754944e-38, %v1112_v63  ;;  %vm1111_vm4 = vcmp.eq.f32.partialorder %v1110_v0, 8.507059e+37 }
0x1c00   :  { %v1674_v59 = vpop.eup %1673 }
0x1c01   :  { %v1102_v60 = vmul.f32 %v1674_v59, %v1100_v11  ;;  %vm1107_vm1 = vweird.f32 %v1674_v59 }
0x1c02   :  { %vm1108_vm3 = vmor %vm1106_vm2, %vm1107_vm1 }
0x1c03   :  { %v1103_v61 = vsub.f32 1.0, %v1102_v60 }
0x1c05   :  { %v1104_v44 = vmul.f32 %v1674_v59, %v1103_v61  ;;  %v1549_v61 = vld [vmem:[%s2041_s2 + $0x40] sm:$0xff] }
0x1c06   :  { %1334 = vmatpush.bf16.msra.mxu0 %v1549_v61 }
0x1c07   :  { %v1105_v62 = vadd.f32 %v1674_v59, %v1104_v44  ;;  %v1548_v44 = vld [vmem:[%s2041_s2 + $0x38] sm:$0xff] }
0x1c09   :  { %v1109_v1 = vsel %vm1108_vm3, %v1674_v59, %v1105_v62  ;;  %v1250_v62 = vperm.slane %v1685_v13, 3 }
0x1c0a   :  { %v1114_v4 = vsel %vm1111_vm4, %v1113_v2, %v1109_v1  ;;  %1335 = vmatpush.bf16.msra.mxu0 %v1548_v44 }
0x1c0b   :  { %v1117_v5 = vmul.f32 %v1114_v4, %v1069_v45 }
0x1c68   :  { %v1120_v3 = vpop.permute.xlu0 %1119 }
0x1c69   :  { %v1122_v51 = vmul.f32 %v1120_v3, %v1114_v4 }
0x1c6b   :  { %1124 = vrot.lane.b32.xlu1 %v1122_v51, %s1687_s27  ;;  %v1550_v51 = vld [vmem:[%s2041_s2 + $0x48] sm:$0xff] }
0x1cdd   :  { %v1125_v6 = vpop.permute.xlu1 %1124 }
0x1cde   :  { %v1127_v7 = vadd.f32 %v1125_v6, %v1117_v5  ;;  %v1281_v5 = vperm.slane %v1685_v13, 4 }
0x1ce0   :  { %1675 = vtanh.f32 %v1127_v7 }
0x1ce6   :  { %v1676_v8 = vpop.eup %1675 }
0x1ce7   :  { %1130 = vrot.lane.b32.xlu2 %v1676_v8, %s1687_s27 }
0x1d41   :  { %v1131_v39 = vpop.permute.xlu2 %1130 }
0x1d42   :  { %v1133_v9 = vmul.f32 %v1131_v39, %v1114_v4  ;;  %v1551_v4 = vld [vmem:[%s2041_s2 + $0x50] sm:$0xff] }
0x1d43   :  { %1365 = vmatpush.bf16.msrb.mxu1 %v1551_v4 }
0x1d44   :  { %v1134_v20 = vpack.c.bf16 %v1133_v9, %v1133_v9 }
0x1d46   :  { %1136 = vrot.lane.b32.xlu0 %v1134_v20, %s1688_s28  ;;  %v1553_v20 = vld [vmem:[%s2041_s2 + $0x60] sm:$0xff] }
0x1d47   :  { %1366 = vmatpush.bf16.msrb.mxu1 %v1550_v51 }
0x1db8   :  { %v1137_v15 = vpop.permute.xlu0 %1136 }
0x1db9   :  { %1473 = vmatmul.msk.bf16.vlgmr.msrb.gmra.mxu2 %vm156_vm5, %v1137_v15  ;;  %v1552_v15 = vld [vmem:[%s2041_s2 + $0x58] sm:$0xff] }
0x1dba   :  { %1396 = vmatpush.bf16.msrb.mxu2 %v1553_v20 }
0x1dbe   :  { %1397 = vmatpush.bf16.msrb.mxu2 %v1552_v15 }
0x1e3c   :  { %v1150_v18 = vpop.f32.mrf.mxu2 }
0x1e3d   :  { %v1154_v21 = vadd.f32 %v1150_v18, %v721_v17 }
0x1e3f   :  { %1677 = vtanh.f32 %v1154_v21  ;;  %v1474_v14 = vmul.f32 -1.442695, %v1154_v21 }
0x1e41   :  { %1679 = vpow2.f32 %v1474_v14  ;;  %v1343_v14 = vperm.slane %v1685_v13, 6 }
0x1e44   :  { %v1152_v22 = vpop.f32.mrf.mxu2 }
0x1e45   :  { %v1678_v26 = vpop.eup %1677 }
0x1e46   :  { %1177 = vrot.lane.b32.xlu1 %v1678_v26, %s1687_s27 }
0x1e47   :  { %v1680_v23 = vpop.eup %1679 }
0x1e48   :  { %v1158_v25 = vadd.f32 1.0, %v1680_v23 }
0x1e4a   :  { %1681 = vrcp.f32 %v1158_v25  ;;  %v1170_v32 = vand.u32 2147483648, %v1158_v25  ;;  %vm1164_vm7 = vweird.f32 %v1158_v25  ;;  %v1168_v46 = vand.u32 2147483647, %v1158_v25 }
0x1e4c   :  { %v1171_v34 = vor.u32 1.1754944e-38, %v1170_v32  ;;  %vm1169_vm9 = vcmp.eq.f32.partialorder %v1168_v46, 8.507059e+37 }
0x1e50   :  { %v1682_v27 = vpop.eup %1681 }
0x1e51   :  { %v1160_v28 = vmul.f32 %v1682_v27, %v1158_v25  ;;  %vm1165_vm6 = vweird.f32 %v1682_v27 }
0x1e52   :  { %vm1166_vm8 = vmor %vm1164_vm7, %vm1165_vm6 }
0x1e53   :  { %v1161_v24 = vsub.f32 1.0, %v1160_v28 }
0x1e55   :  { %v1162_v29 = vmul.f32 %v1682_v27, %v1161_v24 }
0x1e57   :  { %v1163_v30 = vadd.f32 %v1682_v27, %v1162_v29  ;;  %v1374_v29 = vperm.slane %v1685_v13, 7 }
0x1e59   :  { %v1167_v19 = vsel %vm1166_vm8, %v1682_v27, %v1163_v30 }
0x1e5a   :  { %v1172_v38 = vsel %vm1169_vm9, %v1171_v34, %v1167_v19 }
0x1e5b   :  { %v1175_v41 = vmul.f32 %v1172_v38, %v1127_v7 }
0x1eb8   :  { %v1178_v37 = vpop.permute.xlu1 %1177 }
0x1eb9   :  { %v1180_v40 = vmul.f32 %v1178_v37, %v1172_v38 }
0x1ebb   :  { %1182 = vrot.lane.b32.xlu2 %v1180_v40, %s1687_s27 }
0x1f15   :  { %v1183_v43 = vpop.permute.xlu2 %1182 }
0x1f16   :  { %v1185_v45 = vadd.f32 %v1183_v43, %v1175_v41 }
0x1f18   :  { %1683 = vtanh.f32 %v1185_v45 }
0x1f1e   :  { %v1684_v47 = vpop.eup %1683 }
0x1f1f   :  { %1188 = vrot.lane.b32.xlu0 %v1684_v47, %s1687_s27 }
0x1f91   :  { %v1189_v50 = vpop.permute.xlu0 %1188 }
0x1f92   :  { %v1191_v52 = vmul.f32 %v1189_v50, %v1172_v38 }
0x1f94   :  { %v1192_v33 = vpack.c.bf16 %v1191_v52, %v1191_v52 }
0x1f96   :  { %1216 = vrot.lane.b32.xlu1 %v1192_v33, %s1688_s28 }
0x2008   :  { %v1217_v54 = vpop.permute.xlu1 %1216 }
0x2009   :  { %1488 = vmatmul.msk.bf16.vlgmr.msra.gmra.mxu1 %vm156_vm5, %v1217_v54 }
0x2086   :  { %v1242_v56 = vpop.f32.mrf.mxu1 }
0x2087   :  { %v1243_v57 = vadd.f32 %v1242_v56, %v1211_v36 }
0x2089   :  { %v1247_v58 = vadd.f32 %v1246_v42, %v1243_v57 }
0x208b   :  { %v1248_v11 = vmax.f32 %v1247_v58, 0.0 }
0x208d   :  { %v1249_v59 = vpack.c.bf16 %v1248_v11, %v1248_v11 }
0x208e   :  { %v1244_v60 = vpop.f32.mrf.mxu1 }
0x208f   :  { %1497 = vmatmul.msk.bf16.vlgmr.msra.gmra.mxu2 %vm156_vm5, %v1249_v59 }
0x2112   :  { %v1275_v63 = vpop.f32.mrf.mxu2 }
0x2113   :  { %v1276_v0 = vadd.f32 %v1275_v63, %v1250_v62 }
0x2115   :  { %v1279_v1 = vmax.f32 %v1276_v0, 0.0 }
0x2117   :  { %v1280_v2 = vpack.c.bf16 %v1279_v1, %v1279_v1 }
0x2119   :  { %1506 = vmatmul.msk.bf16.vlgmr.msrb.gmra.mxu3 %vm156_vm5, %v1280_v2 }
0x211a   :  { %v1277_v3 = vpop.f32.mrf.mxu2 }
0x219c   :  { %v1306_v6 = vpop.f32.mrf.mxu3 }
0x219d   :  { %v1307_v7 = vadd.f32 %v1306_v6, %v1281_v5 }
0x219f   :  { %v1310_v8 = vmax.f32 %v1307_v7, 0.0 }
0x21a1   :  { %v1311_v39 = vpack.c.bf16 %v1310_v8, %v1310_v8 }
0x21a3   :  { %1515 = vmatmul.msk.bf16.vlgmr.msra.gmra.mxu0 %vm156_vm5, %v1311_v39 }
0x21a4   :  { %v1308_v9 = vpop.f32.mrf.mxu3 }
0x2220   :  { %v1337_v17 = vpop.f32.mrf.mxu0 }
0x2221   :  { %v1338_v18 = vadd.f32 %v1337_v17, %v1312_v16 }
0x2223   :  { %v1341_v21 = vmax.f32 %v1338_v18, 0.0 }
0x2225   :  { %v1342_v22 = vpack.c.bf16 %v1341_v21, %v1341_v21 }
0x2227   :  { %1524 = vmatmul.msk.bf16.vlgmr.msrb.gmra.mxu1 %vm156_vm5, %v1342_v22 }
0x2228   :  { %v1339_v26 = vpop.f32.mrf.mxu0 }
0x22a4   :  { %v1368_v23 = vpop.f32.mrf.mxu1 }
0x22a5   :  { %v1369_v25 = vadd.f32 %v1368_v23, %v1343_v14 }
0x22a7   :  { %v1372_v27 = vmax.f32 %v1369_v25, 0.0 }
0x22a9   :  { %v1373_v28 = vpack.c.bf16 %v1372_v27, %v1372_v27 }
0x22ab   :  { %1533 = vmatmul.msk.bf16.vlgmr.msrb.gmra.mxu2 %vm156_vm5, %v1373_v28 }
0x22ac   :  { %v1370_v24 = vpop.f32.mrf.mxu1 }
0x232e   :  { %v1399_v30 = vpop.f32.mrf.mxu2 }
0x232f   :  { %v1400_v32 = vadd.f32 %v1399_v30, %v1374_v29 }
0x2331   :  { %1404 = vst.msk [vmem:[%s2042_s4] sm:$0xff] %vm1403_vm0, %v1400_v32 }
0x2336   :  { %v1401_v46 = vpop.f32.mrf.mxu2 }

</bundles_post_ra>
